<compile_context>
chip_gen: v6e
topology: v6e:2x2x1
jax: 0.10.0
libtpu: 0.0.40
codegen_flags: <defaults>
</compile_context>

<pallas_src>
import jax
import jax.numpy as jnp
from jax.experimental import pallas as pl
from jax.experimental.pallas import tpu as pltpu

SELU_ALPHA = 1.6732632423543772
SELU_SCALE = 1.0507009873554805


def _selu_f32(x):
    # exp() only sees non-positive values -> no inf in the discarded branch.
    return SELU_SCALE * jnp.where(
        x > 0, x, SELU_ALPHA * (jnp.exp(jnp.minimum(x, 0.0)) - 1.0))


def _attention_kernel(x_ref, *refs):
    """refs = (w0, b0, w1, b1, ..., wL, bL, out_ref).

    One sequence tile (tile_m, F) is held in VMEM; all hidden matmuls + SELU
    and the final 1-unit projection run fused on that tile.  All math is f32
    regardless of the wire dtype (v5e has no bf16 VPU/EUP).
    """
    out_ref = refs[-1]
    param_refs = refs[:-1]
    n_pairs = len(param_refs) // 2

    h = x_ref[...].astype(jnp.float32)
    for i in range(n_pairs):
        w = param_refs[2 * i][...].astype(jnp.float32)
        b = param_refs[2 * i + 1][...].astype(jnp.float32)
        h = jnp.dot(h, w, preferred_element_type=jnp.float32) + b
        if i < n_pairs - 1:  # SELU after every layer except the 1-unit head
            h = _selu_f32(h)
    out_ref[...] = h.astype(out_ref.dtype)


def _round_up(x, m):
    return ((x + m - 1) // m) * m


def _choose_tile_m(n_seq, tile_m):
    tile = max(8, min(int(tile_m), _round_up(n_seq, 8)))
    tile = _round_up(tile, 8)
    # Keep >= 2 grid steps when there is enough work: v7x has two TensorCores
    # and shards "parallel" grid axes across them.
    if n_seq >= 256 and pl.cdiv(n_seq, tile) < 2:
        tile = _round_up(pl.cdiv(n_seq, 2), 8)
    return tile


def attention_network_pallas(x, params, *, tile_m=512, wire_dtype=None):
    """x: (N, F). params: list of (W, b) with W: (in, out), b: (1, out).

    wire_dtype: optional storage/DMA dtype for x and params (e.g.
    jnp.bfloat16) -- halves HBM traffic; in-kernel compute stays f32.
    """
    n_seq, n_feat = x.shape
    out_dtype = x.dtype

    if wire_dtype is not None:
        x = x.astype(wire_dtype)
        params = [(w.astype(wire_dtype), b.astype(wire_dtype)) for w, b in params]

    tile = _choose_tile_m(n_seq, tile_m)
    n_pad = _round_up(n_seq, tile)
    if n_pad != n_seq:
        # Rare ragged remainder: zero-pad the sequence dim; padded rows are
        # row-wise independent and sliced off below.
        x = jnp.pad(x, ((0, n_pad - n_seq), (0, 0)))

    grid = (n_pad // tile,)

    flat_params = []
    in_specs = [pl.BlockSpec((tile, n_feat), lambda i: (i, 0))]
    for w, b in params:
        # Full-array blocks: weights/biases are tiny and stay VMEM-resident.
        in_specs.append(pl.BlockSpec(w.shape, lambda i: (0, 0)))
        in_specs.append(pl.BlockSpec(b.shape, lambda i: (0, 0)))
        flat_params.extend([w, b])

    out_specs = pl.BlockSpec((tile, 1), lambda i: (i, 0))

    # Advisory cost estimate so XLA schedules the surrounding graph sensibly.
    flops = 0
    transcendentals = 0
    for li, (w, _) in enumerate(params):
        flops += 2 * n_pad * w.shape[0] * w.shape[1] + n_pad * w.shape[1]
        if li < len(params) - 1:
            transcendentals += n_pad * w.shape[1]  # exp() inside SELU
    bytes_accessed = (
        x.size * x.dtype.itemsize
        + sum(p.size * p.dtype.itemsize for p in flat_params)
        + n_pad * jnp.dtype(out_dtype).itemsize)

    out = pl.pallas_call(
        _attention_kernel,
        grid=grid,
        in_specs=in_specs,
        out_specs=out_specs,
        out_shape=jax.ShapeDtypeStruct((n_pad, 1), out_dtype),
        compiler_params=pltpu.CompilerParams(
            dimension_semantics=("parallel",)),
        cost_estimate=pl.CostEstimate(
            flops=flops,
            transcendentals=transcendentals,
            bytes_accessed=bytes_accessed),
    )(x, *flat_params)

    return out[:n_seq] if n_pad != n_seq else out


def init_attention_params(key, n_input_features, n_layers=2, n_units=32):
    """Matches the PyTorch module's init scheme:
      weight ~ N(0, sqrt(1 / prod(weight.shape))),
      bias   ~ U(-1/sqrt(fan_in), +1/sqrt(fan_in))   (nn.Linear default).
    Weights are returned pre-transposed as (in_features, out_features)."""
    layer_dims = []
    in_f = n_input_features
    for _ in range(n_layers):
        layer_dims.append((in_f, n_units))
        in_f = n_units
    layer_dims.append((in_f, 1))

    params = []
    for fan_in, fan_out in layer_dims:
        key, kw, kb = jax.random.split(key, 3)
        std = (1.0 / (fan_in * fan_out)) ** 0.5
        w = std * jax.random.normal(kw, (fan_in, fan_out), dtype=jnp.float32)
        bound = 1.0 / (fan_in ** 0.5)
        b = jax.random.uniform(kb, (1, fan_out), dtype=jnp.float32,
                               minval=-bound, maxval=bound)
        params.append((w, b))
    return params


def attention_network_ref(x, params):
    """Pure-JAX reference for sanity checking."""
    h = x
    for i, (w, b) in enumerate(params):
        h = jnp.dot(h, w, preferred_element_type=jnp.float32) + b
        if i < len(params) - 1:
            h = _selu_f32(h)
    return h.astype(x.dtype)


if __name__ == "__main__":
    key = jax.random.PRNGKey(0)
    n_seq, n_in, n_units, n_layers = 1024, 32, 32, 2

    key, kx = jax.random.split(key)
    x = jax.random.normal(kx, (n_seq, n_in), dtype=jnp.float32)
    params = init_attention_params(key, n_in, n_layers=n_layers, n_units=n_units)

    # 1) f32 end-to-end (exact module semantics), 2 grid steps of tile_m=512.
    out = jax.block_until_ready(attention_network_pallas(x, params, tile_m=512))
    ref = attention_network_ref(x, params)
    assert out.shape == (n_seq, 1), out.shape
    assert jnp.allclose(out, ref, atol=1e-5, rtol=1e-5), (
        f"f32 max abs err = {jnp.max(jnp.abs(out - ref))}")

    # 2) bf16 on the wire (half the HBM traffic), f32 compute in-kernel.
    out_bf = jax.block_until_ready(
        attention_network_pallas(x, params, tile_m=512, wire_dtype=jnp.bfloat16))
    x_r = x.astype(jnp.bfloat16).astype(jnp.float32)
    params_r = [(w.astype(jnp.bfloat16).astype(jnp.float32),
                 b.astype(jnp.bfloat16).astype(jnp.float32)) for w, b in params]
    ref_bf = attention_network_ref(x_r, params_r)
    assert out_bf.shape == (n_seq, 1), out_bf.shape
    assert jnp.allclose(out_bf, ref_bf, atol=1e-4, rtol=1e-4), (
        f"bf16-wire max abs err = {jnp.max(jnp.abs(out_bf - ref_bf))}")

    # 3) Ragged sequence count (exercises wrapper-side padding + slice).
    x_small = x[:100]
    out_small = jax.block_until_ready(attention_network_pallas(x_small, params))
    ref_small = attention_network_ref(x_small, params)
    assert out_small.shape == (100, 1), out_small.shape
    assert jnp.allclose(out_small, ref_small, atol=1e-5, rtol=1e-5), (
        f"ragged max abs err = {jnp.max(jnp.abs(out_small - ref_small))}")

    print("KERNEL_OK")
</pallas_src>

<mosaic_0001>
module attributes {stable_mosaic.version = 11 : i64} {
  func.func @_attention_kernel(%arg0: i32, %arg1: memref<512x32xf32, #tpu.memory_space<vmem>>, %arg2: memref<32x32xf32, #tpu.memory_space<vmem>>, %arg3: memref<1x32xf32, #tpu.memory_space<vmem>>, %arg4: memref<32x32xf32, #tpu.memory_space<vmem>>, %arg5: memref<1x32xf32, #tpu.memory_space<vmem>>, %arg6: memref<32x1xf32, #tpu.memory_space<vmem>>, %arg7: memref<1x1xf32, #tpu.memory_space<vmem>>, %arg8: memref<512x1xf32, #tpu.memory_space<vmem>>) attributes {dimension_semantics = [#tpu.dimension_semantics<parallel>], iteration_bounds = array<i64: 2>, scalar_prefetch = 0 : i64, scratch_operands = 0 : i64, tpu.core_type = #tpu.core_type<tc>, window_params = [{transform_indices = @transform_0, window_bounds = array<i64: 512, 32>}, {pipeline_mode = #tpu.pipeline_mode<synchronous>, transform_indices = @transform_1, window_bounds = array<i64: 32, 32>}, {pipeline_mode = #tpu.pipeline_mode<synchronous>, transform_indices = @transform_2, window_bounds = array<i64: 1, 32>}, {pipeline_mode = #tpu.pipeline_mode<synchronous>, transform_indices = @transform_3, window_bounds = array<i64: 32, 32>}, {pipeline_mode = #tpu.pipeline_mode<synchronous>, transform_indices = @transform_4, window_bounds = array<i64: 1, 32>}, {pipeline_mode = #tpu.pipeline_mode<synchronous>, transform_indices = @transform_5, window_bounds = array<i64: 32, 1>}, {pipeline_mode = #tpu.pipeline_mode<synchronous>, transform_indices = @transform_6, window_bounds = array<i64: 1, 1>}, {transform_indices = @transform_7, window_bounds = array<i64: 512, 1>}]} {
    %c0 = arith.constant 0 : index
    %c0_0 = arith.constant 0 : index
    %0 = vector.load %arg1[%c0, %c0_0] : memref<512x32xf32, #tpu.memory_space<vmem>>, vector<512x32xf32>
    %c0_1 = arith.constant 0 : index
    %c0_2 = arith.constant 0 : index
    %1 = vector.load %arg2[%c0_1, %c0_2] : memref<32x32xf32, #tpu.memory_space<vmem>>, vector<32x32xf32>
    %c0_3 = arith.constant 0 : index
    %c0_4 = arith.constant 0 : index
    %2 = vector.load %arg3[%c0_3, %c0_4] : memref<1x32xf32, #tpu.memory_space<vmem>>, vector<1x32xf32>
    %cst = arith.constant dense<0.000000e+00> : vector<512x32xf32>
    %3 = tpu.matmul %0, %1, %cst {dimension_numbers = #tpu.dot_dimension_numbers<[1], [0], [0], [1], [0, 0, 1, 1], [], []>} : vector<512x32xf32>, vector<32x32xf32>, vector<512x32xf32> -> vector<512x32xf32>
    %4 = vector.broadcast %2 : vector<1x32xf32> to vector<512x32xf32>
    %5 = arith.addf %3, %4 : vector<512x32xf32>
    %cst_5 = arith.constant 0.000000e+00 : f32
    %6 = vector.broadcast %cst_5 : f32 to vector<512x32xf32>
    %7 = arith.cmpf ogt, %5, %6 : vector<512x32xf32>
    %cst_6 = arith.constant 0.000000e+00 : f32
    %8 = vector.broadcast %cst_6 : f32 to vector<512x32xf32>
    %9 = arith.minimumf %5, %8 : vector<512x32xf32>
    %10 = math.exp %9 : vector<512x32xf32>
    %cst_7 = arith.constant 1.000000e+00 : f32
    %11 = vector.broadcast %cst_7 : f32 to vector<512x32xf32>
    %12 = arith.subf %10, %11 : vector<512x32xf32>
    %cst_8 = arith.constant 1.67326319 : f32
    %13 = vector.broadcast %cst_8 : f32 to vector<512x32xf32>
    %14 = arith.mulf %13, %12 : vector<512x32xf32>
    %15 = arith.select %7, %5, %14 : vector<512x32xi1>, vector<512x32xf32>
    %cst_9 = arith.constant 1.05070102 : f32
    %16 = vector.broadcast %cst_9 : f32 to vector<512x32xf32>
    %17 = arith.mulf %16, %15 : vector<512x32xf32>
    %c0_10 = arith.constant 0 : index
    %c0_11 = arith.constant 0 : index
    %18 = vector.load %arg4[%c0_10, %c0_11] : memref<32x32xf32, #tpu.memory_space<vmem>>, vector<32x32xf32>
    %c0_12 = arith.constant 0 : index
    %c0_13 = arith.constant 0 : index
    %19 = vector.load %arg5[%c0_12, %c0_13] : memref<1x32xf32, #tpu.memory_space<vmem>>, vector<1x32xf32>
    %cst_14 = arith.constant dense<0.000000e+00> : vector<512x32xf32>
    %20 = tpu.matmul %17, %18, %cst_14 {dimension_numbers = #tpu.dot_dimension_numbers<[1], [0], [0], [1], [0, 0, 1, 1], [], []>} : vector<512x32xf32>, vector<32x32xf32>, vector<512x32xf32> -> vector<512x32xf32>
    %21 = vector.broadcast %19 : vector<1x32xf32> to vector<512x32xf32>
    %22 = arith.addf %20, %21 : vector<512x32xf32>
    %cst_15 = arith.constant 0.000000e+00 : f32
    %23 = vector.broadcast %cst_15 : f32 to vector<512x32xf32>
    %24 = arith.cmpf ogt, %22, %23 : vector<512x32xf32>
    %cst_16 = arith.constant 0.000000e+00 : f32
    %25 = vector.broadcast %cst_16 : f32 to vector<512x32xf32>
    %26 = arith.minimumf %22, %25 : vector<512x32xf32>
    %27 = math.exp %26 : vector<512x32xf32>
    %cst_17 = arith.constant 1.000000e+00 : f32
    %28 = vector.broadcast %cst_17 : f32 to vector<512x32xf32>
    %29 = arith.subf %27, %28 : vector<512x32xf32>
    %cst_18 = arith.constant 1.67326319 : f32
    %30 = vector.broadcast %cst_18 : f32 to vector<512x32xf32>
    %31 = arith.mulf %30, %29 : vector<512x32xf32>
    %32 = arith.select %24, %22, %31 : vector<512x32xi1>, vector<512x32xf32>
    %cst_19 = arith.constant 1.05070102 : f32
    %33 = vector.broadcast %cst_19 : f32 to vector<512x32xf32>
    %34 = arith.mulf %33, %32 : vector<512x32xf32>
    %c0_20 = arith.constant 0 : index
    %c0_21 = arith.constant 0 : index
    %35 = vector.load %arg6[%c0_20, %c0_21] : memref<32x1xf32, #tpu.memory_space<vmem>>, vector<32x1xf32>
    %c0_22 = arith.constant 0 : index
    %c0_23 = arith.constant 0 : index
    %36 = vector.load %arg7[%c0_22, %c0_23] : memref<1x1xf32, #tpu.memory_space<vmem>>, vector<1x1xf32>
    %cst_24 = arith.constant dense<0.000000e+00> : vector<512x1xf32>
    %37 = tpu.matmul %34, %35, %cst_24 {dimension_numbers = #tpu.dot_dimension_numbers<[1], [0], [0], [1], [0, 0, 1, 1], [], []>} : vector<512x32xf32>, vector<32x1xf32>, vector<512x1xf32> -> vector<512x1xf32>
    %38 = vector.broadcast %36 : vector<1x1xf32> to vector<512x1xf32>
    %39 = arith.addf %37, %38 : vector<512x1xf32>
    %c0_25 = arith.constant 0 : index
    %c0_26 = arith.constant 0 : index
    %40 = vector.load %arg8[%c0_25, %c0_26] : memref<512x1xf32, #tpu.memory_space<vmem>>, vector<512x1xf32>
    tpu.vector_store %arg8[%c0_25, %c0_26], %39 {strides = array<i32>} : memref<512x1xf32, #tpu.memory_space<vmem>>, vector<512x1xf32>,
    return
  }
  func.func @transform_0(%arg0: i32) -> (i32, i32) {
    %c0_i32 = arith.constant 0 : i32
    %c0_i32_0 = arith.constant 0 : i32
    return %arg0, %c0_i32 : i32, i32
  }
  func.func @transform_1(%arg0: i32) -> (i32, i32) {
    %c0_i32 = arith.constant 0 : i32
    %c0_i32_0 = arith.constant 0 : i32
    %c0_i32_1 = arith.constant 0 : i32
    return %c0_i32, %c0_i32_0 : i32, i32
  }
  func.func @transform_2(%arg0: i32) -> (i32, i32) {
    %c0_i32 = arith.constant 0 : i32
    %c0_i32_0 = arith.constant 0 : i32
    %c0_i32_1 = arith.constant 0 : i32
    return %c0_i32, %c0_i32_0 : i32, i32
  }
  func.func @transform_3(%arg0: i32) -> (i32, i32) {
    %c0_i32 = arith.constant 0 : i32
    %c0_i32_0 = arith.constant 0 : i32
    %c0_i32_1 = arith.constant 0 : i32
    return %c0_i32, %c0_i32_0 : i32, i32
  }
  func.func @transform_4(%arg0: i32) -> (i32, i32) {
    %c0_i32 = arith.constant 0 : i32
    %c0_i32_0 = arith.constant 0 : i32
    %c0_i32_1 = arith.constant 0 : i32
    return %c0_i32, %c0_i32_0 : i32, i32
  }
  func.func @transform_5(%arg0: i32) -> (i32, i32) {
    %c0_i32 = arith.constant 0 : i32
    %c0_i32_0 = arith.constant 0 : i32
    %c0_i32_1 = arith.constant 0 : i32
    return %c0_i32, %c0_i32_0 : i32, i32
  }
  func.func @transform_6(%arg0: i32) -> (i32, i32) {
    %c0_i32 = arith.constant 0 : i32
    %c0_i32_0 = arith.constant 0 : i32
    %c0_i32_1 = arith.constant 0 : i32
    return %c0_i32, %c0_i32_0 : i32, i32
  }
  func.func @transform_7(%arg0: i32) -> (i32, i32) {
    %c0_i32 = arith.constant 0 : i32
    %c0_i32_0 = arith.constant 0 : i32
    return %arg0, %c0_i32 : i32, i32
  }
}

</mosaic_0001>

<bundles_post_ra>
// kernel: tpu_custom_call.1
= control target key start
LH: loop header
LB: loop body
LE: loop exit
PB: predicated region body
PF: predicated region fallthrough
CT: control target
= control target key end

     0   :  { %s4433_s26 = smov 0   ;;  %s5885_s0 = inlined_call_operand.vmem [shape: f32[1024,32], index: 0, kind: input, shape index: {}]   ;;  %s5886_s1 = inlined_call_operand.vmem [shape: f32[32,32], index: 1, kind: input, shape index: {}]   ;;  %s5887_s2 = inlined_call_operand.vmem [shape: f32[1,32], index: 2, kind: input, shape index: {}]   ;;  %s5888_s3 = inlined_call_operand.vmem [shape: f32[32,32], index: 3, kind: input, shape index: {}]   ;;  %s5889_s4 = inlined_call_operand.vmem [shape: f32[1,32], index: 4, kind: input, shape index: {}]   ;;  %s5890_s5 = inlined_call_operand.vmem [shape: f32[32,1], index: 5, kind: input, shape index: {}]   ;;  %s5891_s6 = inlined_call_operand.<no memory space> [shape: f32[1,1], index: 6, kind: input, shape index: {}]   ;;  %s5892_s7 = inlined_call_operand.vmem [shape: f32[1024,1], index: 7, kind: output, shape index: {}]  }
   0x1   :  { %v12_v0 = vstv %s5891_s6 }
   0x2   :  { %13 = vst [vmem:[#allocation2] sm:$0x1] %v12_v0 }
   0x3 LB: > { %s3258_s27 = sadd.s32 4294967295, %s4388_s26   ;;  %p3262_p0 = scmp.ge.s32.totalorder %s4388_s26, 1  ;;  %s4388_s26 = sphi %s4433_s26, %s19_s26  }
   0x4   : > { %p240_p1 = scmp.lt.s32.totalorder %s4388_s26, 3 }
   0x6   : > { %p241_p2 = pnand %p3262_p0, %p240_p1 }
   0x7   : > { %s3263_s8 = sshll.u32 (!%p241_p2), %s3258_s27, 6 }
   0x8   : > { %244 = sbr.rel (%p241_p2) target bundleno = 812 (0x32c), region = 48  ;;  %p273_p3 = scmp.lt.s32.totalorder (!%p241_p2), %s3263_s8, 127 }
   0xd   : > { %v351_v1 = vld [vmem:[%s5886_s1 + $0x18] sm:$0xff]  ;;  %v350_v2 = vld [vmem:[%s5886_s1 + $0x10] sm:$0xff]  ;;  %v349_v3 = vld [vmem:[%s5886_s1 + $0x8] sm:$0xff]  ;;  %s5894_s8 = smov (!%p273_p3, %s3263_s8), 127  ;;  %vm359_vm0 = vcmask 261120  }
   0xe   : > { %3796 = vmatprep.subr.mxu0 %v351_v1  ;;  %4108 = vmatprep.subr.mxu1 %v351_v1  ;;  %v348_v4 = vld [vmem:[%s5886_s1] sm:$0xff]  ;;  %s3264_s13 = sshll.u32 %s5894_s8, 3  ;;  %v1452_v5 = vld [vmem:[%s5888_s3 + $0x18] sm:$0xff]  ;;  %v1451_v16 = vld [vmem:[%s5888_s3 + $0x10] sm:$0xff] }
   0xf   : > { %3797 = vmatpush3.msra.mxu0 %v351_v1  ;;  %4112 = vmatpush3.msra.mxu1 %v351_v1  ;;  %s4461_s16 = scalar_lea.vmem %s5885_s0, %s3264_s13  ;;  %v1450_v21 = vld [vmem:[%s5888_s3 + $0x8] sm:$0xff]  ;;  %s5688_s22 = scalar_lea.vmem %s5892_s7, %s3264_s13 }
  0x10   : > { %3798 = vmatprep.subr.mxu0 %v350_v2  ;;  %4109 = vmatprep.subr.mxu1 %v350_v2  ;;  %v284_v6 = vld [vmem:[%s4461_s16] sm:$0xff]  ;;  %v285_v7 = vld [vmem:[%s4461_s16 + $0x8] sm:$0xff]  ;;  %v286_v8 = vld [vmem:[%s4461_s16 + $0x10] sm:$0xff] }
  0x11   : > { %3799 = vmatpush3.msra.mxu0 %v350_v2  ;;  %4113 = vmatpush3.msra.mxu1 %v350_v2  ;;  %v287_v9 = vld [vmem:[%s4461_s16 + $0x18] sm:$0xff]  ;;  %v288_v10 = vld [vmem:[%s4461_s16 + $0x20] sm:$0xff]  ;;  %v289_v11 = vld [vmem:[%s4461_s16 + $0x28] sm:$0xff] }
  0x12   : > { %3800 = vmatprep.subr.mxu0 %v349_v3  ;;  %4110 = vmatprep.subr.mxu1 %v349_v3  ;;  %v316_v12 = vld [vmem:[%s4461_s16 + $0x100] sm:$0xff]  ;;  %v317_v13 = vld [vmem:[%s4461_s16 + $0x108] sm:$0xff]  ;;  %v290_v14 = vld [vmem:[%s4461_s16 + $0x30] sm:$0xff] }
  0x13   : > { %3801 = vmatpush3.msra.mxu0 %v349_v3  ;;  %4114 = vmatpush3.msra.mxu1 %v349_v3  ;;  %v318_v15 = vld [vmem:[%s4461_s16 + $0x110] sm:$0xff]  ;;  %v319_v17 = vld [vmem:[%s4461_s16 + $0x118] sm:$0xff]  ;;  %v320_v19 = vld [vmem:[%s4461_s16 + $0x120] sm:$0xff] }
  0x14   : > { %3802 = vmatprep.subr.mxu0 %v348_v4  ;;  %4111 = vmatprep.subr.mxu1 %v348_v4  ;;  %v291_v18 = vld [vmem:[%s4461_s16 + $0x38] sm:$0xff]  ;;  %v292_v20 = vld [vmem:[%s4461_s16 + $0x40] sm:$0xff]  ;;  %v321_v22 = vld [vmem:[%s4461_s16 + $0x128] sm:$0xff] }
  0x15   : > { %3803 = vmatpush3.msra.mxu0 %v348_v4  ;;  %3804 = vmatprep.mubr.msk.f32.mxu0 %vm359_vm0, %v284_v6  ;;  %v293_v23 = vld [vmem:[%s4461_s16 + $0x48] sm:$0xff]  ;;  %v322_v24 = vld [vmem:[%s4461_s16 + $0x130] sm:$0xff]  ;;  %v323_v26 = vld [vmem:[%s4461_s16 + $0x138] sm:$0xff] }
  0x16   : > { %3805 = vmatmul.mubr.msk.f32.vlgmr.msra.gmra.mxu0 %vm359_vm0, %v285_v7  ;;  %4115 = vmatpush3.msra.mxu1 %v348_v4  ;;  %v294_v25 = vld [vmem:[%s4461_s16 + $0x50] sm:$0xff]  ;;  %v295_v27 = vld [vmem:[%s4461_s16 + $0x58] sm:$0xff]  ;;  %v324_v28 = vld [vmem:[%s4461_s16 + $0x140] sm:$0xff] }
  0x17   : > { %3807 = vmatprep.mubr.msk.f32.mxu0 %vm359_vm0, %v286_v8  ;;  %3900 = vmatprep.subr.mxu1 %v1452_v5  ;;  %v296_v29 = vld [vmem:[%s4461_s16 + $0x60] sm:$0xff]  ;;  %v325_v30 = vld [vmem:[%s4461_s16 + $0x148] sm:$0xff]  ;;  %v326_v32 = vld [vmem:[%s4461_s16 + $0x150] sm:$0xff] }
  0x18   : > { %3852 = vmatprep.mubr.msk.f32.mxu1 %vm359_vm0, %v316_v12  ;;  %v297_v31 = vld [vmem:[%s4461_s16 + $0x68] sm:$0xff]  ;;  %v298_v33 = vld [vmem:[%s4461_s16 + $0x70] sm:$0xff]  ;;  %v327_v34 = vld [vmem:[%s4461_s16 + $0x158] sm:$0xff] }
  0x19   : > { %3853 = vmatmul.mubr.msk.f32.vlgmr.msra.gmra.mxu1 %vm359_vm0, %v317_v13  ;;  %v299_v35 = vld [vmem:[%s4461_s16 + $0x78] sm:$0xff]  ;;  %v328_v36 = vld [vmem:[%s4461_s16 + $0x160] sm:$0xff]  ;;  %v329_v38 = vld [vmem:[%s4461_s16 + $0x168] sm:$0xff] }
  0x1a   : > { %3808 = vmatmul.mubr.msk.f32.gmra.mxu0 %vm359_vm0, %v287_v9  ;;  %3855 = vmatprep.mubr.msk.f32.mxu1 %vm359_vm0, %v318_v15  ;;  %v300_v37 = vld [vmem:[%s4461_s16 + $0x80] sm:$0xff]  ;;  %v301_v39 = vld [vmem:[%s4461_s16 + $0x88] sm:$0xff]  ;;  %v330_v40 = vld [vmem:[%s4461_s16 + $0x170] sm:$0xff] }
  0x1b   : > { %3810 = vmatprep.mubr.msk.f32.mxu0 %vm359_vm0, %v288_v10  ;;  %3901 = vmatpush3.msra.mxu1 %v1452_v5  ;;  %v302_v41 = vld [vmem:[%s4461_s16 + $0x90] sm:$0xff]  ;;  %v331_v42 = vld [vmem:[%s4461_s16 + $0x178] sm:$0xff]  ;;  %v332_v44 = vld [vmem:[%s4461_s16 + $0x180] sm:$0xff] }
  0x1c   : > { %3902 = vmatprep.subr.mxu1 %v1451_v16  ;;  %v303_v43 = vld [vmem:[%s4461_s16 + $0x98] sm:$0xff]  ;;  %v304_v45 = vld [vmem:[%s4461_s16 + $0xa0] sm:$0xff]  ;;  %v333_v46 = vld [vmem:[%s4461_s16 + $0x188] sm:$0xff] }
  0x1d   : > { %3856 = vmatmul.mubr.msk.f32.gmra.mxu1 %vm359_vm0, %v319_v17  ;;  %v305_v47 = vld [vmem:[%s4461_s16 + $0xa8] sm:$0xff]  ;;  %v334_v48 = vld [vmem:[%s4461_s16 + $0x190] sm:$0xff]  ;;  %v335_v50 = vld [vmem:[%s4461_s16 + $0x198] sm:$0xff] }
  0x1e   : > { %3811 = vmatmul.mubr.msk.f32.gmra.mxu0 %vm359_vm0, %v289_v11  ;;  %3858 = vmatprep.mubr.msk.f32.mxu1 %vm359_vm0, %v320_v19  ;;  %v306_v49 = vld [vmem:[%s4461_s16 + $0xb0] sm:$0xff]  ;;  %v307_v51 = vld [vmem:[%s4461_s16 + $0xb8] sm:$0xff]  ;;  %v336_v52 = vld [vmem:[%s4461_s16 + $0x1a0] sm:$0xff] }
  0x1f   : > { %3813 = vmatprep.mubr.msk.f32.mxu0 %vm359_vm0, %v290_v14  ;;  %3903 = vmatpush3.msra.mxu1 %v1451_v16  ;;  %v308_v53 = vld [vmem:[%s4461_s16 + $0xc0] sm:$0xff]  ;;  %v337_v54 = vld [vmem:[%s4461_s16 + $0x1a8] sm:$0xff]  ;;  %v338_v56 = vld [vmem:[%s4461_s16 + $0x1b0] sm:$0xff] }
  0x20   : > { %3904 = vmatprep.subr.mxu1 %v1450_v21  ;;  %v309_v55 = vld [vmem:[%s4461_s16 + $0xc8] sm:$0xff]  ;;  %v310_v57 = vld [vmem:[%s4461_s16 + $0xd0] sm:$0xff]  ;;  %v339_v58 = vld [vmem:[%s4461_s16 + $0x1b8] sm:$0xff] }
  0x21   : > { %3859 = vmatmul.mubr.msk.f32.gmra.mxu1 %vm359_vm0, %v321_v22  ;;  %v311_v59 = vld [vmem:[%s4461_s16 + $0xd8] sm:$0xff]  ;;  %v340_v60 = vld [vmem:[%s4461_s16 + $0x1c0] sm:$0xff]  ;;  %v341_v62 = vld [vmem:[%s4461_s16 + $0x1c8] sm:$0xff] }
  0x22   : > { %3814 = vmatmul.mubr.msk.f32.gmra.mxu0 %vm359_vm0, %v291_v18  ;;  %3861 = vmatprep.mubr.msk.f32.mxu1 %vm359_vm0, %v322_v24  ;;  %v312_v61 = vld [vmem:[%s4461_s16 + $0xe0] sm:$0xff]  ;;  %v313_v63 = vld [vmem:[%s4461_s16 + $0xe8] sm:$0xff]  ;;  %v342_v0 = vld [vmem:[%s4461_s16 + $0x1d0] sm:$0xff] }
  0x23   : > { %3816 = vmatprep.mubr.msk.f32.mxu0 %vm359_vm0, %v292_v20  ;;  %3905 = vmatpush3.msra.mxu1 %v1450_v21  ;;  %v314_v1 = vld [vmem:[%s4461_s16 + $0xf0] sm:$0xff]  ;;  %v343_v2 = vld [vmem:[%s4461_s16 + $0x1d8] sm:$0xff]  ;;  %v344_v4 = vld [vmem:[%s4461_s16 + $0x1e0] sm:$0xff] }
  0x24   : > { %v315_v3 = vld [vmem:[%s4461_s16 + $0xf8] sm:$0xff]  ;;  %v345_v5 = vld [vmem:[%s4461_s16 + $0x1e8] sm:$0xff]  ;;  %v346_v6 = vld [vmem:[%s4461_s16 + $0x1f0] sm:$0xff] }
  0x25   : > { %3862 = vmatmul.mubr.msk.f32.gmra.mxu1 %vm359_vm0, %v323_v26  ;;  %v347_v7 = vld [vmem:[%s4461_s16 + $0x1f8] sm:$0xff]  ;;  %v1449_v8 = vld [vmem:[%s5888_s3] sm:$0xff] }
  0x26   : > { %3817 = vmatmul.mubr.msk.f32.gmra.mxu0 %vm359_vm0, %v293_v23  ;;  %3864 = vmatprep.mubr.msk.f32.mxu1 %vm359_vm0, %v324_v28  ;;  %v4606_v9 = vld [vmem:[%s5887_s2] ss:$0 sm:$0xff] }
  0x27   : > { %3819 = vmatprep.mubr.msk.f32.mxu0 %vm359_vm0, %v294_v25  ;;  %3906 = vmatprep.subr.mxu1 %v1449_v8 }
  0x28   : > { %3907 = vmatpush3.msra.mxu1 %v1449_v8 }
  0x29   : > { %3865 = vmatmul.mubr.msk.f32.gmra.mxu1 %vm359_vm0, %v325_v30 }
  0x2a   : > { %3820 = vmatmul.mubr.msk.f32.gmra.mxu0 %vm359_vm0, %v295_v27  ;;  %3867 = vmatprep.mubr.msk.f32.mxu1 %vm359_vm0, %v326_v32 }
  0x2b   : > { %3822 = vmatprep.mubr.msk.f32.mxu0 %vm359_vm0, %v296_v29 }
  0x2d   : > { %3868 = vmatmul.mubr.msk.f32.gmra.mxu1 %vm359_vm0, %v327_v34 }
  0x2e   : > { %3823 = vmatmul.mubr.msk.f32.gmra.mxu0 %vm359_vm0, %v297_v31  ;;  %3870 = vmatprep.mubr.msk.f32.mxu1 %vm359_vm0, %v328_v36 }
  0x2f   : > { %3825 = vmatprep.mubr.msk.f32.mxu0 %vm359_vm0, %v298_v33 }
  0x31   : > { %3871 = vmatmul.mubr.msk.f32.gmra.mxu1 %vm359_vm0, %v329_v38 }
  0x32   : > { %3826 = vmatmul.mubr.msk.f32.gmra.mxu0 %vm359_vm0, %v299_v35  ;;  %3873 = vmatprep.mubr.msk.f32.mxu1 %vm359_vm0, %v330_v40 }
  0x33   : > { %3828 = vmatprep.mubr.msk.f32.mxu0 %vm359_vm0, %v300_v37 }
  0x35   : > { %3874 = vmatmul.mubr.msk.f32.gmra.mxu1 %vm359_vm0, %v331_v42 }
  0x36   : > { %3829 = vmatmul.mubr.msk.f32.gmra.mxu0 %vm359_vm0, %v301_v39  ;;  %3876 = vmatprep.mubr.msk.f32.mxu1 %vm359_vm0, %v332_v44 }
  0x37   : > { %3831 = vmatprep.mubr.msk.f32.mxu0 %vm359_vm0, %v302_v41 }
  0x39   : > { %3877 = vmatmul.mubr.msk.f32.gmra.mxu1 %vm359_vm0, %v333_v46 }
  0x3a   : > { %3832 = vmatmul.mubr.msk.f32.gmra.mxu0 %vm359_vm0, %v303_v43  ;;  %3879 = vmatprep.mubr.msk.f32.mxu1 %vm359_vm0, %v334_v48 }
  0x3b   : > { %3834 = vmatprep.mubr.msk.f32.mxu0 %vm359_vm0, %v304_v45 }
  0x3d   : > { %3880 = vmatmul.mubr.msk.f32.gmra.mxu1 %vm359_vm0, %v335_v50 }
  0x3e   : > { %3835 = vmatmul.mubr.msk.f32.gmra.mxu0 %vm359_vm0, %v305_v47  ;;  %3882 = vmatprep.mubr.msk.f32.mxu1 %vm359_vm0, %v336_v52 }
  0x3f   : > { %3837 = vmatprep.mubr.msk.f32.mxu0 %vm359_vm0, %v306_v49 }
  0x41   : > { %3883 = vmatmul.mubr.msk.f32.gmra.mxu1 %vm359_vm0, %v337_v54 }
  0x42   : > { %3838 = vmatmul.mubr.msk.f32.gmra.mxu0 %vm359_vm0, %v307_v51  ;;  %3885 = vmatprep.mubr.msk.f32.mxu1 %vm359_vm0, %v338_v56 }
  0x43   : > { %3840 = vmatprep.mubr.msk.f32.mxu0 %vm359_vm0, %v308_v53 }
  0x45   : > { %3886 = vmatmul.mubr.msk.f32.gmra.mxu1 %vm359_vm0, %v339_v58 }
  0x46   : > { %3841 = vmatmul.mubr.msk.f32.gmra.mxu0 %vm359_vm0, %v309_v55  ;;  %3888 = vmatprep.mubr.msk.f32.mxu1 %vm359_vm0, %v340_v60 }
  0x47   : > { %3843 = vmatprep.mubr.msk.f32.mxu0 %vm359_vm0, %v310_v57 }
  0x49   : > { %3889 = vmatmul.mubr.msk.f32.gmra.mxu1 %vm359_vm0, %v341_v62 }
  0x4a   : > { %3844 = vmatmul.mubr.msk.f32.gmra.mxu0 %vm359_vm0, %v311_v59  ;;  %3891 = vmatprep.mubr.msk.f32.mxu1 %vm359_vm0, %v342_v0 }
  0x4b   : > { %3846 = vmatprep.mubr.msk.f32.mxu0 %vm359_vm0, %v312_v61 }
  0x4d   : > { %3892 = vmatmul.mubr.msk.f32.gmra.mxu1 %vm359_vm0, %v343_v2 }
  0x4e   : > { %3847 = vmatmul.mubr.msk.f32.gmra.mxu0 %vm359_vm0, %v313_v63  ;;  %3894 = vmatprep.mubr.msk.f32.mxu1 %vm359_vm0, %v344_v4 }
  0x4f   : > { %3849 = vmatprep.mubr.msk.f32.mxu0 %vm359_vm0, %v314_v1 }
  0x51   : > { %3895 = vmatmul.mubr.msk.f32.gmra.mxu1 %vm359_vm0, %v345_v5 }
  0x52   : > { %3850 = vmatmul.mubr.msk.f32.gmra.mxu0 %vm359_vm0, %v315_v3  ;;  %3897 = vmatprep.mubr.msk.f32.mxu1 %vm359_vm0, %v346_v6 }
  0x55   : > { %3898 = vmatmul.mubr.msk.f32.gmra.mxu1 %vm359_vm0, %v347_v7 }
  0xd6   : > { %v3806_v10 = vpop.f32.mrf.mxu0 }
  0xd7   : > { %v4609_v11 = vadd.f32 %v3806_v10, %v4606_v9 }
  0xd8   : > { %v618_v12 = vpop.f32.mrf.mxu0 }
  0xd9   : > { %v1002_v13 = vmin.f32 %v4609_v11, 0.0  ;;  %v4613_v14 = vadd.f32 %v4606_v9, %v618_v12  ;;  %v4626_v26 = vpop.f32.mrf.mxu1  ;;  %vm938_vm1 = vcmp.gt.f32.partialorder %v4609_v11, 0.0 }
  0xda   : > { %v3809_v15 = vpop.f32.mrf.mxu0 }
  0xdb   : > { %v1067_v16 = vmul.f32 1.442695, %v1002_v13  ;;  %v1001_v17 = vmin.f32 %v4613_v14, 0.0  ;;  %v4617_v18 = vadd.f32 %v3809_v15, %v4606_v9  ;;  %v4637_v36 = vpop.f32.mrf.mxu1  ;;  %vm937_vm2 = vcmp.gt.f32.partialorder %v4613_v14, 0.0 }
  0xdc   : > { %v628_v19 = vpop.f32.mrf.mxu0 }
  0xdd   : > { %4124 = vpow2.f32 %v1067_v16  ;;  %v1065_v20 = vmul.f32 1.442695, %v1001_v17  ;;  %v1004_v21 = vmin.f32 %v4617_v18, 0.0  ;;  %v4621_v22 = vadd.f32 %v4606_v9, %v628_v19  ;;  %v4646_v44 = vpop.f32.mrf.mxu1 }
  0xde   : > { %v3812_v23 = vpop.f32.mrf.mxu0  ;;  %vm940_vm3 = vcmp.gt.f32.partialorder %v4617_v18, 0.0 }
  0xdf   : > { %4126 = vpow2.f32 %v1065_v20  ;;  %v1071_v24 = vmul.f32 1.442695, %v1004_v21  ;;  %v4624_v25 = vadd.f32 %v3812_v23, %v4606_v9  ;;  %v1003_v27 = vmin.f32 %v4621_v22, 0.0  ;;  %v4654_v55 = vpop.f32.mrf.mxu1 }
  0xe0   : > { %v638_v28 = vpop.f32.mrf.mxu0  ;;  %vm939_vm4 = vcmp.gt.f32.partialorder %v4621_v22, 0.0 }
  0xe1   : > { %4128 = vpow2.f32 %v1071_v24  ;;  %v1006_v29 = vmin.f32 %v4624_v25, 0.0  ;;  %v4631_v30 = vadd.f32 %v4606_v9, %v638_v28  ;;  %v1069_v31 = vmul.f32 1.442695, %v1003_v27  ;;  %v4665_v4 = vpop.f32.mrf.mxu1 }
  0xe2   : > { %v3815_v32 = vpop.f32.mrf.mxu0  ;;  %vm942_vm5 = vcmp.gt.f32.partialorder %v4624_v25, 0.0 }
  0xe3   : > { %v1075_v33 = vmul.f32 1.442695, %v1006_v29  ;;  %v1005_v34 = vmin.f32 %v4631_v30, 0.0  ;;  %v4635_v35 = vadd.f32 %v3815_v32, %v4606_v9  ;;  %4130 = vpow2.f32 %v1069_v31 }
  0xe4   : > { %v648_v37 = vpop.f32.mrf.mxu0  ;;  %vm941_vm6 = vcmp.gt.f32.partialorder %v4631_v30, 0.0 }
  0xe5   : > { %4132 = vpow2.f32 %v1075_v33  ;;  %v1073_v38 = vmul.f32 1.442695, %v1005_v34  ;;  %v1008_v39 = vmin.f32 %v4635_v35, 0.0  ;;  %v4641_v40 = vadd.f32 %v4606_v9, %v648_v37 }
  0xe6   : > { %v3818_v41 = vpop.f32.mrf.mxu0  ;;  %vm944_vm7 = vcmp.gt.f32.partialorder %v4635_v35, 0.0 }
  0xe7   : > { %4134 = vpow2.f32 %v1073_v38  ;;  %v1079_v42 = vmul.f32 1.442695, %v1008_v39  ;;  %v4644_v43 = vadd.f32 %v3818_v41, %v4606_v9  ;;  %v1007_v45 = vmin.f32 %v4641_v40, 0.0 }
  0xe8   : > { %v658_v46 = vpop.f32.mrf.mxu0  ;;  %vm943_vm8 = vcmp.gt.f32.partialorder %v4641_v40, 0.0 }
  0xe9   : > { %4136 = vpow2.f32 %v1079_v42  ;;  %v1010_v47 = vmin.f32 %v4644_v43, 0.0  ;;  %v4651_v48 = vadd.f32 %v4606_v9, %v658_v46  ;;  %v1077_v50 = vmul.f32 1.442695, %v1007_v45 }
  0xea   : > { %v4125_v49 = vpop.eup %4124  ;;  %v3821_v51 = vpop.f32.mrf.mxu0  ;;  %vm946_vm9 = vcmp.gt.f32.partialorder %v4644_v43, 0.0 }
  0xeb   : > { %v3333_v52 = vadd.f32 -1.0, %v4125_v49  ;;  %v1083_v53 = vmul.f32 1.442695, %v1010_v47  ;;  %v1009_v54 = vmin.f32 %v4651_v48, 0.0  ;;  %4138 = vpow2.f32 %v1077_v50 }
  0xec   : > { %v4127_v56 = vpop.eup %4126  ;;  %v4657_v57 = vadd.f32 %v3821_v51, %v4606_v9  ;;  %v668_v58 = vpop.f32.mrf.mxu0  ;;  %vm945_vm10 = vcmp.gt.f32.partialorder %v4651_v48, 0.0 }
  0xed   : > { %v1258_v59 = vmul.f32 1.6732632, %v3333_v52  ;;  %v3332_v60 = vadd.f32 -1.0, %v4127_v56  ;;  %4140 = vpow2.f32 %v1083_v53  ;;  %v1081_v61 = vmul.f32 1.442695, %v1009_v54 }
  0xee   : > { %v4129_v62 = vpop.eup %4128  ;;  %v1012_v63 = vmin.f32 %v4657_v57, 0.0  ;;  %v4662_v0 = vadd.f32 %v4606_v9, %v668_v58  ;;  %v3824_v1 = vpop.f32.mrf.mxu0  ;;  %vm948_vm11 = vcmp.gt.f32.partialorder %v4657_v57, 0.0 }
  0xef   : > { %v1257_v2 = vmul.f32 1.6732632, %v3332_v60  ;;  %v3335_v3 = vadd.f32 -1.0, %v4129_v62  ;;  %4142 = vpow2.f32 %v1081_v61  ;;  %v1322_v5 = vsel %vm938_vm1, %v4609_v11, %v1258_v59 }
  0xf0   : > { %v1087_v6 = vmul.f32 1.442695, %v1012_v63  ;;  %v1011_v7 = vmin.f32 %v4662_v0, 0.0  ;;  %v678_v8 = vpop.f32.mrf.mxu0  ;;  %v4131_v10 = vpop.eup %4130  ;;  %v4672_v15 = vadd.f32 %v3824_v1, %v4606_v9  ;;  %v1386_v23 = vmul.f32 1.050701, %v1322_v5 }
  0xf1   : > { %v1321_v12 = vsel %vm937_vm2, %v4613_v14, %v1257_v2  ;;  %v1260_v13 = vmul.f32 1.6732632, %v3335_v3  ;;  %v4675_v16 = vadd.f32 %v4606_v9, %v678_v8  ;;  %v3334_v20 = vadd.f32 -1.0, %v4131_v10  ;;  %v4679_v14 = vpop.f32.mrf.mxu1 }
  0xf2   : > { %v4133_v17 = vpop.eup %4132  ;;  %v1385_v19 = vmul.f32 1.050701, %v1321_v12  ;;  %4144 = vpow2.f32 %v1087_v6  ;;  %v1085_v11 = vmul.f32 1.442695, %v1011_v7  ;;  %v3827_v21 = vpop.f32.mrf.mxu0  ;;  %v1014_v27 = vmin.f32 %v4672_v15, 0.0 }
  0xf3   : > { %v3337_v24 = vadd.f32 -1.0, %v4133_v17  ;;  %v1324_v29 = vsel %vm940_vm3, %v4617_v18, %v1260_v13  ;;  %v1259_v31 = vmul.f32 1.6732632, %v3334_v20  ;;  %v1013_v38 = vmin.f32 %v4675_v16, 0.0  ;;  %v4699_v50 = vpop.f32.mrf.mxu1 }
  0xf4   : > { %v4135_v28 = vpop.eup %4134  ;;  %4146 = vpow2.f32 %v1085_v11  ;;  %v688_v32 = vpop.f32.mrf.mxu0  ;;  %3908 = vmatprep.mubr.msk.f32.mxu1 %vm359_vm0, %v1385_v19  ;;  %v1091_v37 = vmul.f32 1.442695, %v1014_v27  ;;  %v4693_v18 = vadd.f32 %v3827_v21, %v4606_v9  ;;  %v1388_v51 = vmul.f32 1.050701, %v1324_v29 }
  0xf5   : > { %v1262_v33 = vmul.f32 1.6732632, %v3337_v24  ;;  %v3336_v34 = vadd.f32 -1.0, %v4135_v28  ;;  %3909 = vmatmul.mubr.msk.f32.vlgmr.msra.gmra.mxu1 %vm359_vm0, %v1386_v23  ;;  %v1323_v41 = vsel %vm939_vm4, %v4621_v22, %v1259_v31  ;;  %v4696_v42 = vadd.f32 %v4606_v9, %v688_v32  ;;  %v4718_v5 = vpop.f32.mrf.mxu1 }
  0xf6   : > { %v4137_v39 = vpop.eup %4136  ;;  %v3830_v45 = vpop.f32.mrf.mxu0  ;;  %v1387_v46 = vmul.f32 1.050701, %v1323_v41  ;;  %4148 = vpow2.f32 %v1091_v37  ;;  %v1089_v22 = vmul.f32 1.442695, %v1013_v38  ;;  %v1016_v59 = vmin.f32 %v4693_v18, 0.0 }
  0xf7   : > { %v1261_v47 = vmul.f32 1.6732632, %v3336_v34  ;;  %v3339_v49 = vadd.f32 -1.0, %v4137_v39  ;;  %v1326_v54 = vsel %vm942_vm5, %v4624_v25, %v1262_v33  ;;  %v1015_v63 = vmin.f32 %v4696_v42, 0.0  ;;  %v4732_v29 = vpop.f32.mrf.mxu1 }
  0xf8   : > { %v698_v52 = vpop.f32.mrf.mxu0  ;;  %v4139_v53 = vpop.eup %4138  ;;  %3911 = vmatprep.mubr.msk.f32.mxu1 %vm359_vm0, %v1387_v46  ;;  %4150 = vpow2.f32 %v1089_v22  ;;  %v4716_v3 = vadd.f32 %v3830_v45, %v4606_v9  ;;  %v1390_v7 = vmul.f32 1.050701, %v1326_v54  ;;  %vm947_vm12 = vcmp.gt.f32.partialorder %v4662_v0, 0.0 }
  0xf9   : > { %v1325_v56 = vsel %vm941_vm6, %v4631_v30, %v1261_v47  ;;  %v1264_v58 = vmul.f32 1.6732632, %v3339_v49  ;;  %v3338_v62 = vadd.f32 -1.0, %v4139_v53  ;;  %3912 = vmatmul.mubr.msk.f32.gmra.mxu1 %vm359_vm0, %v1388_v51  ;;  %v1095_v30 = vmul.f32 1.442695, %v1016_v59  ;;  %v4751_v49 = vpop.f32.mrf.mxu1 }
  0xfa   : > { %v4141_v60 = vpop.eup %4140  ;;  %v1389_v61 = vmul.f32 1.050701, %v1325_v56  ;;  %v3833_v1 = vpop.f32.mrf.mxu0  ;;  %v1093_v10 = vmul.f32 1.442695, %v1015_v63  ;;  %v4721_v12 = vadd.f32 %v4606_v9, %v698_v52  ;;  %v1018_v11 = vmin.f32 %v4716_v3, 0.0 }
  0xfb   : > { %v1328_v25 = vsel %vm944_vm7, %v4635_v35, %v1264_v58  ;;  %v3341_v2 = vadd.f32 -1.0, %v4141_v60  ;;  %v1263_v8 = vmul.f32 1.6732632, %v3338_v62  ;;  %4152 = vpow2.f32 %v1095_v30  ;;  %v4763_v30 = vpop.f32.mrf.mxu1 }
  0xfc   : > { %v4143_v6 = vpop.eup %4142  ;;  %v708_v13 = vpop.f32.mrf.mxu0  ;;  %3914 = vmatprep.mubr.msk.f32.mxu1 %vm359_vm0, %v1389_v61  ;;  %v1392_v19 = vmul.f32 1.050701, %v1328_v25  ;;  %4154 = vpow2.f32 %v1093_v10  ;;  %v1017_v28 = vmin.f32 %v4721_v12, 0.0  ;;  %v1099_v32 = vmul.f32 1.442695, %v1018_v11 }
  0xfd   : > { %v1266_v35 = vmul.f32 1.6732632, %v3341_v2  ;;  %v3340_v17 = vadd.f32 -1.0, %v4143_v6  ;;  %v1327_v20 = vsel %vm943_vm8, %v4641_v40, %v1263_v8  ;;  %3915 = vmatmul.mubr.msk.f32.gmra.mxu1 %vm359_vm0, %v1390_v7  ;;  %v4738_v33 = vadd.f32 %v3833_v1, %v4606_v9 }
  0xfe   : > { %v3836_v21 = vpop.f32.mrf.mxu0  ;;  %v1391_v24 = vmul.f32 1.050701, %v1327_v20  ;;  %v1097_v39 = vmul.f32 1.442695, %v1017_v28  ;;  %v4742_v41 = vadd.f32 %v4606_v9, %v708_v13  ;;  %4156 = vpow2.f32 %v1099_v32 }
  0xff   : > { %v4145_v23 = vpop.eup %4144  ;;  %v1265_v27 = vmul.f32 1.6732632, %v3340_v17  ;;  %v1330_v31 = vsel %vm946_vm9, %v4644_v43, %v1266_v35  ;;  %v4745_v45 = vadd.f32 %v3836_v21, %v4606_v9  ;;  %vm950_vm13 = vcmp.gt.f32.partialorder %v4672_v15, 0.0  ;;  %v2552_v17 = vld [vmem:[%s5890_s5 + $0x18] sm:$0xff] }
 0x100   : > { %v3343_v40 = vadd.f32 -1.0, %v4145_v23  ;;  %v718_v34 = vpop.f32.mrf.mxu0  ;;  %3917 = vmatprep.mubr.msk.f32.mxu1 %vm359_vm0, %v1391_v24  ;;  %4158 = vpow2.f32 %v1097_v39  ;;  %v1394_v51 = vmul.f32 1.050701, %v1330_v31  ;;  %v1019_v52 = vmin.f32 %v4742_v41, 0.0  ;;  %4004 = vmatprep.subr.mxu0 %v2552_v17 }
 0x101   : > { %v4147_v37 = vpop.eup %4146  ;;  %v1329_v38 = vsel %vm945_vm10, %v4651_v48, %v1265_v27  ;;  %3918 = vmatmul.mubr.msk.f32.gmra.mxu1 %vm359_vm0, %v1392_v19  ;;  %v1020_v48 = vmin.f32 %v4738_v33, 0.0  ;;  %v1022_v59 = vmin.f32 %v4745_v45, 0.0  ;;  %v4759_v60 = vadd.f32 %v4606_v9, %v718_v34  ;;  %v2551_v19 = vld [vmem:[%s5890_s5 + $0x10] sm:$0xff]  ;;  %v4783_v27 = vpop.f32.mrf.mxu1  ;;  %4005 = vmatpush3.msra.mxu0 %v2552_v17 }
 0x102   : > { %v1393_v46 = vmul.f32 1.050701, %v1329_v38  ;;  %v1268_v43 = vmul.f32 1.6732632, %v3343_v40  ;;  %v3342_v47 = vadd.f32 -1.0, %v4147_v37  ;;  %v3839_v53 = vpop.f32.mrf.mxu0  ;;  %vm949_vm14 = vcmp.gt.f32.partialorder %v4675_v16, 0.0  ;;  %4006 = vmatprep.subr.mxu0 %v2551_v19 }
 0x103   : > { %v4149_v54 = vpop.eup %4148  ;;  %v1103_v58 = vmul.f32 1.442695, %v1020_v48  ;;  %v1101_v63 = vmul.f32 1.442695, %v1019_v52  ;;  %v1107_v2 = vmul.f32 1.442695, %v1022_v59  ;;  %v4770_v35 = vadd.f32 %v3839_v53, %v4606_v9  ;;  %4007 = vmatpush3.msra.mxu0 %v2551_v19  ;;  %v4799_v48 = vpop.f32.mrf.mxu1 }
 0x104   : > { %v1267_v22 = vmul.f32 1.6732632, %v3342_v47  ;;  %3920 = vmatprep.mubr.msk.f32.mxu1 %vm359_vm0, %v1393_v46  ;;  %v1332_v56 = vsel %vm948_vm11, %v4657_v57, %v1268_v43  ;;  %v3345_v62 = vadd.f32 -1.0, %v4149_v54  ;;  %v728_v8 = vpop.f32.mrf.mxu0  ;;  %v1021_v10 = vmin.f32 %v4759_v60, 0.0 }
 0x105   : > { %3921 = vmatmul.mubr.msk.f32.gmra.mxu1 %vm359_vm0, %v1394_v51  ;;  %v4151_v1 = vpop.eup %4150  ;;  %4160 = vpow2.f32 %v1103_v58  ;;  %v1396_v6 = vmul.f32 1.050701, %v1332_v56  ;;  %v4781_v24 = vadd.f32 %v4606_v9, %v728_v8  ;;  %v4788_v40 = vadd.f32 %v4626_v26, %v4606_v9 }
 0x106   : > { %v1331_v61 = vsel %vm947_vm12, %v4662_v0, %v1267_v22  ;;  %v1270_v57 = vmul.f32 1.6732632, %v3345_v62  ;;  %v3344_v7 = vadd.f32 -1.0, %v4151_v1  ;;  %4162 = vpow2.f32 %v1101_v63  ;;  %v3842_v32 = vpop.f32.mrf.mxu0  ;;  %v4813_v1 = vpop.f32.mrf.mxu1 }
 0x107   : > { %v1395_v25 = vmul.f32 1.050701, %v1331_v61  ;;  %4164 = vpow2.f32 %v1107_v2  ;;  %v1105_v23 = vmul.f32 1.442695, %v1021_v10  ;;  %v1024_v38 = vmin.f32 %v4770_v35, 0.0 }
 0x108   : > { %v4153_v0 = vpop.eup %4152  ;;  %v1269_v13 = vmul.f32 1.6732632, %v3344_v7  ;;  %v1334_v11 = vsel %vm950_vm13, %v4672_v15, %v1270_v57  ;;  %v2550_v15 = vld [vmem:[%s5890_s5 + $0x8] sm:$0xff]  ;;  %vm952_vm15 = vcmp.gt.f32.partialorder %v4693_v18, 0.0  ;;  %vm951_vm1 = vcmp.gt.f32.partialorder %v4696_v42, 0.0  ;;  %v738_v53 = vpop.f32.mrf.mxu0 }
 0x109   : > { %3923 = vmatprep.mubr.msk.f32.mxu1 %vm359_vm0, %v1395_v25  ;;  %v4155_v20 = vpop.eup %4154  ;;  %v3347_v21 = vadd.f32 -1.0, %v4153_v0  ;;  %4166 = vpow2.f32 %v1105_v23  ;;  %v1398_v39 = vmul.f32 1.050701, %v1334_v11  ;;  %v1111_v43 = vmul.f32 1.442695, %v1024_v38  ;;  %4008 = vmatprep.subr.mxu0 %v2550_v15 }
 0x10a   : > { %3924 = vmatmul.mubr.msk.f32.gmra.mxu1 %vm359_vm0, %v1396_v6  ;;  %v1333_v28 = vsel %vm949_vm14, %v4675_v16, %v1269_v13  ;;  %v3346_v31 = vadd.f32 -1.0, %v4155_v20  ;;  %v1023_v47 = vmin.f32 %v4781_v24, 0.0  ;;  %4009 = vmatpush3.msra.mxu0 %v2550_v15  ;;  %v1034_v56 = vmin.f32 %v4788_v40, 0.0  ;;  %v3845_v57 = vpop.f32.mrf.mxu0 }
 0x10b   : > { %v1397_v34 = vmul.f32 1.050701, %v1333_v28  ;;  %v1272_v37 = vmul.f32 1.6732632, %v3347_v21  ;;  %v4157_v46 = vpop.eup %4156  ;;  %4168 = vpow2.f32 %v1111_v43  ;;  %v4805_v62 = vadd.f32 %v3842_v32, %v4606_v9  ;;  %v4828_v28 = vpop.f32.mrf.mxu1 }
 0x10c   : > { %v1271_v16 = vmul.f32 1.6732632, %v3346_v31  ;;  %v3349_v52 = vadd.f32 -1.0, %v4157_v46  ;;  %v1109_v61 = vmul.f32 1.442695, %v1023_v47  ;;  %vm954_vm2 = vcmp.gt.f32.partialorder %v4716_v3, 0.0  ;;  %v748_v15 = vpop.f32.mrf.mxu0 }
 0x10d   : > { %v1336_v26 = vsel %vm952_vm15, %v4693_v18, %v1272_v37  ;;  %3926 = vmatprep.mubr.msk.f32.mxu1 %vm359_vm0, %v1397_v34  ;;  %v4159_v51 = vpop.eup %4158  ;;  %vm953_vm3 = vcmp.gt.f32.partialorder %v4721_v12, 0.0  ;;  %v4818_v6 = vadd.f32 %v4606_v9, %v738_v53  ;;  %v1026_v10 = vmin.f32 %v4805_v62, 0.0  ;;  %v4844_v43 = vpop.f32.mrf.mxu1 }
 0x10e   : > { %v1335_v22 = vsel %vm951_vm1, %v4696_v42, %v1271_v16  ;;  %3927 = vmatmul.mubr.msk.f32.gmra.mxu1 %vm359_vm0, %v1398_v39  ;;  %v3348_v18 = vadd.f32 -1.0, %v4159_v51  ;;  %v1400_v58 = vmul.f32 1.050701, %v1336_v26  ;;  %v1274_v59 = vmul.f32 1.6732632, %v3349_v52 }
 0x10f   : > { %v1399_v54 = vmul.f32 1.050701, %v1335_v22  ;;  %v4810_v42 = vadd.f32 %v4606_v9, %v4637_v36  ;;  %4170 = vpow2.f32 %v1109_v61  ;;  %v1131_v19 = vmul.f32 1.442695, %v1034_v56 }
 0x110   : > { %v1273_v63 = vmul.f32 1.6732632, %v3348_v18  ;;  %v1338_v2 = vsel %vm954_vm2, %v4716_v3, %v1274_v59  ;;  %v4825_v3 = vadd.f32 %v4646_v44, %v4606_v9  ;;  %vm956_vm4 = vcmp.gt.f32.partialorder %v4738_v33, 0.0 }
 0x111   : > { %3929 = vmatprep.mubr.msk.f32.mxu1 %vm359_vm0, %v1399_v54  ;;  %v1402_v20 = vmul.f32 1.050701, %v1338_v2  ;;  %v1033_v23 = vmin.f32 %v4810_v42, 0.0  ;;  %v1115_v31 = vmul.f32 1.442695, %v1026_v10  ;;  %v1025_v32 = vmin.f32 %v4818_v6, 0.0 }
 0x112   : > { %v4161_v25 = vpop.eup %4160  ;;  %3930 = vmatmul.mubr.msk.f32.gmra.mxu1 %vm359_vm0, %v1400_v58  ;;  %v1337_v36 = vsel %vm953_vm3, %v4721_v12, %v1273_v63  ;;  %vm955_vm5 = vcmp.gt.f32.partialorder %v4742_v41, 0.0  ;;  %v4837_v44 = vadd.f32 %v4606_v9, %v4654_v55  ;;  %v4840_v37 = vadd.f32 %v3845_v57, %v4606_v9  ;;  %v3848_v55 = vpop.f32.mrf.mxu0 }
 0x113   : > { %v4163_v7 = vpop.eup %4162  ;;  %v3351_v8 = vadd.f32 -1.0, %v4161_v25  ;;  %v1401_v13 = vmul.f32 1.050701, %v1337_v36  ;;  %4172 = vpow2.f32 %v1115_v31  ;;  %v1113_v46 = vmul.f32 1.442695, %v1025_v32  ;;  %v4861_v25 = vpop.f32.mrf.mxu1 }
 0x114   : > { %v4165_v0 = vpop.eup %4164  ;;  %v3350_v17 = vadd.f32 -1.0, %v4163_v7  ;;  %4174 = vpow2.f32 %v1131_v19  ;;  %v1129_v51 = vmul.f32 1.442695, %v1033_v23  ;;  %vm958_vm6 = vcmp.gt.f32.partialorder %v4745_v45, 0.0 }
 0x115   : > { %v1276_v11 = vmul.f32 1.6732632, %v3351_v8  ;;  %v3353_v21 = vadd.f32 -1.0, %v4165_v0  ;;  %3932 = vmatprep.mubr.msk.f32.mxu1 %vm359_vm0, %v1401_v13  ;;  %4176 = vpow2.f32 %v1113_v46  ;;  %v1028_v52 = vmin.f32 %v4840_v37, 0.0  ;;  %v758_v0 = vpop.f32.mrf.mxu0  ;;  %v4867_v19 = vpop.f32.mrf.mxu1 }
 0x116   : > { %v1275_v12 = vmul.f32 1.6732632, %v3350_v17  ;;  %3933 = vmatmul.mubr.msk.f32.gmra.mxu1 %vm359_vm0, %v1402_v20  ;;  %v4167_v38 = vpop.eup %4166  ;;  %v4849_v53 = vadd.f32 %v4606_v9, %v748_v15  ;;  %vm957_vm7 = vcmp.gt.f32.partialorder %v4759_v60, 0.0  ;;  %v1036_v18 = vmin.f32 %v4825_v3, 0.0 }
 0x117   : > { %v1340_v34 = vsel %vm956_vm4, %v4738_v33, %v1276_v11  ;;  %v1278_v16 = vmul.f32 1.6732632, %v3353_v21  ;;  %v3352_v33 = vadd.f32 -1.0, %v4167_v38  ;;  %v1035_v56 = vmin.f32 %v4837_v44, 0.0  ;;  %v3851_v15 = vpop.f32.mrf.mxu0 }
 0x118   : > { %v1339_v39 = vsel %vm955_vm5, %v4742_v41, %v1275_v12  ;;  %v1404_v47 = vmul.f32 1.050701, %v1340_v34  ;;  %v4169_v41 = vpop.eup %4168  ;;  %v1119_v61 = vmul.f32 1.442695, %v1028_v52  ;;  %v4859_v63 = vadd.f32 %v3848_v55, %v4606_v9 }
 0x119   : > { %v1403_v26 = vmul.f32 1.050701, %v1339_v39  ;;  %v1277_v22 = vmul.f32 1.6732632, %v3352_v33  ;;  %v1342_v54 = vsel %vm958_vm6, %v4745_v45, %v1278_v16  ;;  %v3355_v59 = vadd.f32 -1.0, %v4169_v41 }
 0x11a   : > { %v1406_v45 = vmul.f32 1.050701, %v1342_v54  ;;  %4178 = vpow2.f32 %v1119_v61  ;;  %v1027_v36 = vmin.f32 %v4849_v53, 0.0  ;;  %v1135_v8 = vmul.f32 1.442695, %v1036_v18  ;;  %v768_v54 = vpop.f32.mrf.mxu0 }
 0x11b   : > { %3935 = vmatprep.mubr.msk.f32.mxu1 %vm359_vm0, %v1403_v26  ;;  %v1341_v58 = vsel %vm957_vm7, %v4759_v60, %v1277_v22  ;;  %v1280_v7 = vmul.f32 1.6732632, %v3355_v59  ;;  %4180 = vpow2.f32 %v1129_v51  ;;  %v1133_v60 = vmul.f32 1.442695, %v1035_v56 }
 0x11c   : > { %3936 = vmatmul.mubr.msk.f32.gmra.mxu1 %vm359_vm0, %v1404_v47  ;;  %v1405_v2 = vmul.f32 1.050701, %v1341_v58  ;;  %v4171_v57 = vpop.eup %4170  ;;  %v1117_v13 = vmul.f32 1.442695, %v1027_v36  ;;  %v1030_v17 = vmin.f32 %v4859_v63, 0.0  ;;  %vm960_vm8 = vcmp.gt.f32.partialorder %v4770_v35, 0.0 }
 0x11d   : > { %v3354_v10 = vadd.f32 -1.0, %v4171_v57  ;;  %vm959_vm9 = vcmp.gt.f32.partialorder %v4781_v24, 0.0  ;;  %v4873_v11 = vadd.f32 %v4665_v4, %v4606_v9  ;;  %v1344_v21 = vsel %vm960_vm8, %v4770_v35, %v1280_v7  ;;  %v4884_v4 = vpop.f32.mrf.mxu1 }
 0x11e   : > { %3938 = vmatprep.mubr.msk.f32.mxu1 %vm359_vm0, %v1405_v2  ;;  %4182 = vpow2.f32 %v1117_v13  ;;  %v1123_v23 = vmul.f32 1.442695, %v1030_v17  ;;  %v4877_v12 = vadd.f32 %v4606_v9, %v758_v0  ;;  %v4882_v32 = vadd.f32 %v4606_v9, %v4679_v14 }
 0x11f   : > { %v1279_v20 = vmul.f32 1.6732632, %v3354_v10  ;;  %4184 = vpow2.f32 %v1135_v8  ;;  %v1408_v35 = vmul.f32 1.050701, %v1344_v21  ;;  %v1038_v46 = vmin.f32 %v4873_v11, 0.0  ;;  %v4899_v18 = vpop.f32.mrf.mxu1 }
 0x120   : > { %3939 = vmatmul.mubr.msk.f32.gmra.mxu1 %vm359_vm0, %v1406_v45  ;;  %v4173_v34 = vpop.eup %4172  ;;  %4186 = vpow2.f32 %v1123_v23  ;;  %v1029_v26 = vmin.f32 %v4877_v12, 0.0  ;;  %v1037_v51 = vmin.f32 %v4882_v32, 0.0  ;;  %v4896_v52 = vadd.f32 %v4699_v50, %v4606_v9 }
 0x121   : > { %v1343_v31 = vsel %vm959_vm9, %v4781_v24, %v1279_v20  ;;  %v4175_v39 = vpop.eup %4174  ;;  %v3357_v16 = vadd.f32 -1.0, %v4173_v34  ;;  %4188 = vpow2.f32 %v1133_v60  ;;  %v4889_v24 = vadd.f32 %v3851_v15, %v4606_v9 }
 0x122   : > { %v1407_v38 = vmul.f32 1.050701, %v1343_v31  ;;  %v4177_v33 = vpop.eup %4176  ;;  %v1121_v55 = vmul.f32 1.442695, %v1029_v26  ;;  %v3365_v22 = vadd.f32 -1.0, %v4175_v39  ;;  %vm962_vm10 = vcmp.gt.f32.partialorder %v4805_v62, 0.0 }
 0x123   : > { %v1282_v14 = vmul.f32 1.6732632, %v3357_v16  ;;  %v3356_v47 = vadd.f32 -1.0, %v4177_v33  ;;  %v1032_v41 = vmin.f32 %v4889_v24, 0.0  ;;  %v1139_v56 = vmul.f32 1.442695, %v1038_v46 }
 0x124   : > { %3941 = vmatprep.mubr.msk.f32.mxu1 %vm359_vm0, %v1407_v38  ;;  %4190 = vpow2.f32 %v1121_v55  ;;  %vm961_vm11 = vcmp.gt.f32.partialorder %v4818_v6, 0.0  ;;  %v4906_v61 = vadd.f32 %v4606_v9, %v4718_v5  ;;  %v1137_v45 = vmul.f32 1.442695, %v1037_v51  ;;  %v4917_v5 = vpop.f32.mrf.mxu1 }
 0x125   : > { %3942 = vmatmul.mubr.msk.f32.gmra.mxu1 %vm359_vm0, %v1408_v35  ;;  %v1281_v58 = vmul.f32 1.6732632, %v3356_v47  ;;  %v1346_v59 = vsel %vm962_vm10, %v4805_v62, %v1282_v14  ;;  %v1127_v50 = vmul.f32 1.442695, %v1032_v41  ;;  %v4911_v7 = vadd.f32 %v4732_v29, %v4606_v9 }
 0x126   : > { %v4914_v36 = vadd.f32 %v4606_v9, %v768_v54  ;;  %v1040_v0 = vmin.f32 %v4896_v52, 0.0  ;;  %vm970_vm12 = vcmp.gt.f32.partialorder %v4788_v40, 0.0  ;;  %v1290_v60 = vmul.f32 1.6732632, %v3365_v22  ;;  %v4931_v35 = vpop.f32.mrf.mxu1 }
 0x127   : > { %v4179_v2 = vpop.eup %4178  ;;  %v1345_v57 = vsel %vm961_vm11, %v4818_v6, %v1281_v58  ;;  %4192 = vpow2.f32 %v1127_v50  ;;  %v1410_v6 = vmul.f32 1.050701, %v1346_v59  ;;  %vm969_vm13 = vcmp.gt.f32.partialorder %v4810_v42, 0.0 }
 0x128   : > { %v4181_v8 = vpop.eup %4180  ;;  %v1409_v62 = vmul.f32 1.050701, %v1345_v57  ;;  %v3359_v10 = vadd.f32 -1.0, %v4179_v2  ;;  %v1031_v13 = vmin.f32 %v4914_v36, 0.0  ;;  %4194 = vpow2.f32 %v1139_v56  ;;  %v4950_v56 = vpop.f32.mrf.mxu1 }
 0x129   : > { %v1039_v29 = vmin.f32 %v4906_v61, 0.0  ;;  %v4925_v17 = vadd.f32 %v4606_v9, %v4751_v49  ;;  %v3364_v21 = vadd.f32 -1.0, %v4181_v8  ;;  %4196 = vpow2.f32 %v1137_v45 }
 0x12a   : > { %3944 = vmatprep.mubr.msk.f32.mxu1 %vm359_vm0, %v1409_v62  ;;  %v1284_v23 = vmul.f32 1.6732632, %v3359_v10  ;;  %v1125_v31 = vmul.f32 1.442695, %v1031_v13  ;;  %vm972_vm14 = vcmp.gt.f32.partialorder %v4825_v3, 0.0  ;;  %v1042_v39 = vmin.f32 %v4911_v7, 0.0 }
 0x12b   : > { %v4183_v20 = vpop.eup %4182  ;;  %3945 = vmatmul.mubr.msk.f32.gmra.mxu1 %vm359_vm0, %v1410_v6  ;;  %v1143_v34 = vmul.f32 1.442695, %v1040_v0  ;;  %v1354_v16 = vsel %vm970_vm12, %v4788_v40, %v1290_v60  ;;  %vm964_vm15 = vcmp.gt.f32.partialorder %v4840_v37, 0.0  ;;  %v4939_v46 = vadd.f32 %v4606_v9, %v4783_v27  ;;  %v4970_v60 = vpop.f32.mrf.mxu1 }
 0x12c   : > { %v4185_v15 = vpop.eup %4184  ;;  %v3358_v38 = vadd.f32 -1.0, %v4183_v20  ;;  %4198 = vpow2.f32 %v1125_v31  ;;  %v1141_v33 = vmul.f32 1.442695, %v1039_v29  ;;  %v1041_v47 = vmin.f32 %v4925_v17, 0.0 }
 0x12d   : > { %v4187_v49 = vpop.eup %4186  ;;  %v1289_v55 = vmul.f32 1.6732632, %v3364_v21  ;;  %v3367_v22 = vadd.f32 -1.0, %v4185_v15  ;;  %v1348_v41 = vsel %vm964_vm15, %v4840_v37, %v1284_v23  ;;  %vm963_vm1 = vcmp.gt.f32.partialorder %v4849_v53, 0.0 }
 0x12e   : > { %v1283_v26 = vmul.f32 1.6732632, %v3358_v38  ;;  %v3361_v14 = vadd.f32 -1.0, %v4187_v49  ;;  %v4189_v51 = vpop.eup %4188  ;;  %vm971_vm2 = vcmp.gt.f32.partialorder %v4837_v44, 0.0  ;;  %4200 = vpow2.f32 %v1143_v34 }
 0x12f   : > { %v1147_v54 = vmul.f32 1.442695, %v1042_v39  ;;  %v4948_v27 = vadd.f32 %v4763_v30, %v4606_v9  ;;  %v4952_v58 = vmul.f32 1.050701, %v1354_v16  ;;  %v1043_v50 = vmin.f32 %v4939_v46, 0.0 }
 0x130   : > { %v1347_v40 = vsel %vm963_vm1, %v4849_v53, %v1283_v26  ;;  %v4957_v37 = vadd.f32 %v4606_v9, %v4813_v1  ;;  %v1412_v57 = vmul.f32 1.050701, %v1348_v41  ;;  %4202 = vpow2.f32 %v1141_v33  ;;  %v4990_v26 = vpop.f32.mrf.mxu1 }
 0x131   : > { %v1411_v59 = vmul.f32 1.050701, %v1347_v40  ;;  %v4191_v2 = vpop.eup %4190  ;;  %v1286_v53 = vmul.f32 1.6732632, %v3361_v14  ;;  %v1145_v45 = vmul.f32 1.442695, %v1041_v47  ;;  %v1353_v30 = vsel %vm969_vm13, %v4810_v42, %v1289_v55 }
 0x132   : > { %v1292_v8 = vmul.f32 1.6732632, %v3367_v22  ;;  %v3366_v62 = vadd.f32 -1.0, %v4189_v51  ;;  %v3360_v10 = vadd.f32 -1.0, %v4191_v2  ;;  %vm966_vm3 = vcmp.gt.f32.partialorder %v4859_v63, 0.0 }
 0x133   : > { %3947 = vmatprep.mubr.msk.f32.mxu1 %vm359_vm0, %v1411_v59  ;;  %4204 = vpow2.f32 %v1147_v54  ;;  %v1044_v1 = vmin.f32 %v4948_v27, 0.0  ;;  %v4967_v0 = vadd.f32 %v4799_v48, %v4606_v9  ;;  %v1149_v13 = vmul.f32 1.442695, %v1043_v50  ;;  %v5007_v50 = vpop.f32.mrf.mxu1 }
 0x134   : > { %3948 = vmatmul.mubr.msk.f32.gmra.mxu1 %vm359_vm0, %v1412_v57  ;;  %v4193_v6 = vpop.eup %4192  ;;  %v1285_v42 = vmul.f32 1.6732632, %v3360_v10  ;;  %v1045_v29 = vmin.f32 %v4957_v37, 0.0  ;;  %v4975_v20 = vadd.f32 %v4606_v9, %v4844_v43  ;;  %v1350_v21 = vsel %vm966_vm3, %v4859_v63, %v1286_v53 }
 0x135   : > { %vm965_vm4 = vcmp.gt.f32.partialorder %v4877_v12, 0.0  ;;  %4206 = vpow2.f32 %v1145_v45  ;;  %v3363_v48 = vadd.f32 -1.0, %v4193_v6  ;;  %v4195_v23 = vpop.eup %4194  ;;  %v4979_v31 = vmul.f32 1.050701, %v1353_v30 }
 0x136   : > { %v1356_v15 = vsel %vm972_vm14, %v4825_v3, %v1292_v8  ;;  %v1291_v34 = vmul.f32 1.6732632, %v3366_v62  ;;  %v1349_v38 = vsel %vm965_vm4, %v4877_v12, %v1285_v42  ;;  %v4197_v39 = vpop.eup %4196  ;;  %v1151_v43 = vmul.f32 1.442695, %v1044_v1  ;;  %v5021_v1 = vld [vmem:[%s5887_s2] ss:$0 sm:$0xff]  ;;  %v5027_v42 = vpop.f32.mrf.mxu1 }
 0x137   : > { %v1413_v49 = vmul.f32 1.050701, %v1349_v38  ;;  %v1046_v16 = vmin.f32 %v4967_v0, 0.0  ;;  %v4988_v63 = vadd.f32 %v4828_v28, %v4606_v9  ;;  %v1414_v33 = vmul.f32 1.050701, %v1350_v21 }
 0x138   : > { %4208 = vpow2.f32 %v1149_v13  ;;  %v1153_v14 = vmul.f32 1.442695, %v1045_v29  ;;  %v1047_v47 = vmin.f32 %v4975_v20, 0.0  ;;  %v4993_v51 = vmul.f32 1.050701, %v1356_v15 }
 0x139   : > { %v4199_v3 = vpop.eup %4198  ;;  %vm974_vm5 = vcmp.gt.f32.partialorder %v4873_v11, 0.0  ;;  %v1288_v12 = vmul.f32 1.6732632, %v3363_v48  ;;  %v4998_v55 = vadd.f32 %v4606_v9, %v4867_v19  ;;  %3950 = vmatprep.mubr.msk.f32.mxu1 %vm359_vm0, %v1413_v49  ;;  %v1355_v28 = vsel %vm971_vm2, %v4837_v44, %v1291_v34 }
 0x13a   : > { %v3369_v22 = vadd.f32 -1.0, %v4195_v23  ;;  %v3368_v41 = vadd.f32 -1.0, %v4197_v39  ;;  %v3362_v40 = vadd.f32 -1.0, %v4199_v3  ;;  %3951 = vmatmul.mubr.msk.f32.gmra.mxu1 %vm359_vm0, %v1414_v33  ;;  %vm968_vm6 = vcmp.gt.f32.partialorder %v4889_v24, 0.0 }
 0x13b   : > { %4210 = vpow2.f32 %v1151_v43  ;;  %v1155_v54 = vmul.f32 1.442695, %v1046_v16  ;;  %v1048_v59 = vmin.f32 %v4988_v63, 0.0  ;;  %v4201_v19 = vpop.eup %4200  ;;  %v1157_v57 = vmul.f32 1.442695, %v1047_v47  ;;  %v908_v43 = vpop.f32.mrf.mxu1 }
 0x13c   : > { %v1287_v2 = vmul.f32 1.6732632, %v3362_v40  ;;  %4212 = vpow2.f32 %v1153_v14  ;;  %v5011_v44 = vadd.f32 %v4861_v25, %v4606_v9  ;;  %vm973_vm7 = vcmp.gt.f32.partialorder %v4882_v32, 0.0 }
 0x13d   : > { %v1352_v53 = vsel %vm968_vm6, %v4889_v24, %v1288_v12  ;;  %vm967_vm8 = vcmp.gt.f32.partialorder %v4914_v36, 0.0  ;;  %v1049_v45 = vmin.f32 %v4998_v55, 0.0  ;;  %v4203_v30 = vpop.eup %4202  ;;  %v1294_v8 = vmul.f32 1.6732632, %v3369_v22  ;;  %v5065_v40 = vpop.f32.mrf.mxu1 }
 0x13e   : > { %v1293_v62 = vmul.f32 1.6732632, %v3368_v41  ;;  %v1351_v10 = vsel %vm967_vm8, %v4914_v36, %v1287_v2  ;;  %v5025_v9 = vadd.f32 %v5021_v1, %v4899_v18  ;;  %v3371_v25 = vadd.f32 -1.0, %v4201_v19 }
 0x13f   : > { %v1415_v24 = vmul.f32 1.050701, %v1351_v10  ;;  %4214 = vpow2.f32 %v1155_v54  ;;  %v1159_v6 = vmul.f32 1.442695, %v1048_v59  ;;  %v1416_v29 = vmul.f32 1.050701, %v1352_v53 }
 0x140   : > { %v4205_v13 = vpop.eup %4204  ;;  %4216 = vpow2.f32 %v1157_v57  ;;  %v1050_v36 = vmin.f32 %v5011_v44, 0.0  ;;  %v5032_v21 = vadd.f32 %v5021_v1, %v4884_v4  ;;  %v1419_v48 = vmul.f32 1.050701, %v1355_v28 }
 0x141   : > { %v3370_v23 = vadd.f32 -1.0, %v4203_v30  ;;  %v1161_v15 = vmul.f32 1.442695, %v1049_v45  ;;  %3953 = vmatprep.mubr.msk.f32.mxu1 %vm359_vm0, %v1415_v24  ;;  %vm976_vm9 = vcmp.gt.f32.partialorder %v4896_v52, 0.0  ;;  %vm975_vm10 = vcmp.gt.f32.partialorder %v4906_v61, 0.0 }
 0x142   : > { %v4207_v18 = vpop.eup %4206  ;;  %v1051_v34 = vmin.f32 %v5025_v9, 0.0  ;;  %v5040_v38 = vadd.f32 %v5021_v1, %v4931_v35  ;;  %3954 = vmatmul.mubr.msk.f32.gmra.mxu1 %vm359_vm0, %v1416_v29  ;;  %v1358_v4 = vsel %vm974_vm5, %v4873_v11, %v1294_v8  ;;  %v1357_v39 = vsel %vm973_vm7, %v4882_v32, %v1293_v62 }
 0x143   : > { %vm978_vm11 = vcmp.gt.f32.partialorder %v4911_v7, 0.0  ;;  %v3373_v49 = vadd.f32 -1.0, %v4205_v13  ;;  %3956 = vmatprep.mubr.msk.f32.mxu1 %vm359_vm0, %v4979_v31  ;;  %v1296_v16 = vmul.f32 1.6732632, %v3371_v25  ;;  %4218 = vpow2.f32 %v1159_v6 }
 0x144   : > { %v1163_v35 = vmul.f32 1.442695, %v1050_v36  ;;  %v1052_v33 = vmin.f32 %v5032_v21, 0.0  ;;  %v1295_v47 = vmul.f32 1.6732632, %v3370_v23  ;;  %v3372_v3 = vadd.f32 -1.0, %v4207_v18 }
 0x145   : > { %v4209_v14 = vpop.eup %4208  ;;  %4220 = vpow2.f32 %v1161_v15  ;;  %v5055_v11 = vadd.f32 %v5021_v1, %v4917_v5  ;;  %vm977_vm12 = vcmp.gt.f32.partialorder %v4925_v17, 0.0  ;;  %v1165_v32 = vmul.f32 1.442695, %v1051_v34 }
 0x146   : > { %v1053_v12 = vmin.f32 %v5040_v38, 0.0  ;;  %v5061_v31 = vadd.f32 %v5021_v1, %v4970_v60  ;;  %3957 = vmatmul.mubr.msk.f32.gmra.mxu1 %vm359_vm0, %v4952_v58  ;;  %v1422_v28 = vmul.f32 1.050701, %v1358_v4  ;;  %v1421_v22 = vmul.f32 1.050701, %v1357_v39 }
 0x147   : > { %v1298_v41 = vmul.f32 1.6732632, %v3373_v49  ;;  %3959 = vmatprep.mubr.msk.f32.mxu1 %vm359_vm0, %v1419_v48  ;;  %v1360_v54 = vsel %vm976_vm9, %v4896_v52, %v1296_v16  ;;  %vm980_vm13 = vcmp.gt.f32.partialorder %v4948_v27, 0.0  ;;  %v3374_v59 = vadd.f32 -1.0, %v4209_v14 }
 0x148   : > { %v4211_v5 = vpop.eup %4210  ;;  %4222 = vpow2.f32 %v1163_v35  ;;  %v1167_v60 = vmul.f32 1.442695, %v1052_v33  ;;  %v1359_v58 = vsel %vm975_vm10, %v4906_v61, %v1295_v47  ;;  %v1297_v2 = vmul.f32 1.6732632, %v3372_v3 }
 0x149   : > { %v4213_v19 = vpop.eup %4212  ;;  %v1054_v57 = vmin.f32 %v5055_v11, 0.0  ;;  %v5078_v53 = vadd.f32 %v5021_v1, %v4950_v56  ;;  %4224 = vpow2.f32 %v1165_v32  ;;  %v1169_v45 = vmul.f32 1.442695, %v1053_v12  ;;  %v918_v56 = vpop.f32.mrf.mxu1 }
 0x14a   : > { %v1055_v52 = vmin.f32 %v5061_v31, 0.0  ;;  %v5083_v30 = vadd.f32 %v5021_v1, %v5007_v50  ;;  %3960 = vmatmul.mubr.msk.f32.gmra.mxu1 %vm359_vm0, %v4993_v51  ;;  %v1424_v8 = vmul.f32 1.050701, %v1360_v54  ;;  %v1362_v61 = vsel %vm978_vm11, %v4911_v7, %v1298_v41 }
 0x14b   : > { %v3375_v62 = vadd.f32 -1.0, %v4211_v5  ;;  %vm979_vm14 = vcmp.gt.f32.partialorder %v4939_v46, 0.0  ;;  %3962 = vmatprep.mubr.msk.f32.mxu1 %vm359_vm0, %v1421_v22  ;;  %v1299_v25 = vmul.f32 1.6732632, %v3374_v59  ;;  %vm982_vm15 = vcmp.gt.f32.partialorder %v4967_v0, 0.0  ;;  %v3899_v34 = vpop.f32.mrf.mxu1 }
 0x14c   : > { %v4215_v10 = vpop.eup %4214  ;;  %v3376_v50 = vadd.f32 -1.0, %v4213_v19  ;;  %4226 = vpow2.f32 %v1167_v60  ;;  %v5095_v51 = vadd.f32 %v5021_v1, %v4990_v26  ;;  %v1423_v6 = vmul.f32 1.050701, %v1359_v58 }
 0x14d   : > { %v4217_v24 = vpop.eup %4216  ;;  %v1361_v7 = vsel %vm977_vm12, %v4925_v17, %v1297_v2  ;;  %v1171_v13 = vmul.f32 1.442695, %v1054_v57  ;;  %v1056_v29 = vmin.f32 %v5078_v53, 0.0  ;;  %4228 = vpow2.f32 %v1169_v45 }
 0x14e   : > { %v1173_v36 = vmul.f32 1.442695, %v1055_v52  ;;  %v1057_v48 = vmin.f32 %v5083_v30, 0.0  ;;  %v5103_v23 = vadd.f32 %v5021_v1, %v908_v43  ;;  %3963 = vmatmul.mubr.msk.f32.gmra.mxu1 %vm359_vm0, %v1422_v28  ;;  %v1426_v26 = vmul.f32 1.050701, %v1362_v61 }
 0x14f   : > { %v1300_v15 = vmul.f32 1.6732632, %v3375_v62  ;;  %v3377_v18 = vadd.f32 -1.0, %v4215_v10  ;;  %vm981_vm1 = vcmp.gt.f32.partialorder %v4957_v37, 0.0  ;;  %3965 = vmatprep.mubr.msk.f32.mxu1 %vm359_vm0, %v1423_v6  ;;  %v1363_v17 = vsel %vm979_vm14, %v4939_v46, %v1299_v25 }
 0x150   : > { %v1301_v4 = vmul.f32 1.6732632, %v3376_v50  ;;  %v3378_v39 = vadd.f32 -1.0, %v4217_v24  ;;  %v1058_v49 = vmin.f32 %v5095_v51, 0.0  ;;  %v4219_v43 = vpop.eup %4218  ;;  %v1425_v16 = vmul.f32 1.050701, %v1361_v7 }
 0x151   : > { %vm984_vm2 = vcmp.gt.f32.partialorder %v4988_v63, 0.0  ;;  %4230 = vpow2.f32 %v1171_v13  ;;  %v1175_v35 = vmul.f32 1.442695, %v1056_v29  ;;  %v5115_v33 = vadd.f32 %v5021_v1, %v5027_v42  ;;  %v928_v42 = vpop.f32.mrf.mxu1 }
 0x152   : > { %v4221_v14 = vpop.eup %4220  ;;  %4232 = vpow2.f32 %v1173_v36  ;;  %v1177_v47 = vmul.f32 1.442695, %v1057_v48  ;;  %v1059_v3 = vmin.f32 %v5103_v23, 0.0  ;;  %v5119_v46 = vadd.f32 %v5021_v1, %v918_v56  ;;  %3966 = vmatmul.mubr.msk.f32.gmra.mxu1 %vm359_vm0, %v1424_v8 }
 0x153   : > { %v1364_v32 = vsel %vm980_vm13, %v4948_v27, %v1300_v15  ;;  %v1427_v12 = vmul.f32 1.050701, %v1363_v17  ;;  %v1302_v28 = vmul.f32 1.6732632, %v3377_v18  ;;  %vm983_vm3 = vcmp.gt.f32.partialorder %v4975_v20, 0.0  ;;  %3968 = vmatprep.mubr.msk.f32.mxu1 %vm359_vm0, %v1425_v16 }
 0x154   : > { %v1365_v22 = vsel %vm981_vm1, %v4957_v37, %v1301_v4  ;;  %v3379_v41 = vadd.f32 -1.0, %v4219_v43  ;;  %v1303_v5 = vmul.f32 1.6732632, %v3378_v39  ;;  %v1179_v54 = vmul.f32 1.442695, %v1058_v49  ;;  %v2549_v37 = vld [vmem:[%s5890_s5] sm:$0xff] }
 0x155   : > { %v4223_v59 = vpop.eup %4222  ;;  %v3380_v60 = vadd.f32 -1.0, %v4221_v14  ;;  %4234 = vpow2.f32 %v1175_v35  ;;  %v1060_v19 = vmin.f32 %v5115_v33, 0.0  ;;  %v5133_v27 = vadd.f32 %v5021_v1, %v5065_v40  ;;  %4010 = vmatprep.subr.mxu0 %v2549_v37 }
 0x156   : > { %4236 = vpow2.f32 %v1177_v47  ;;  %v1181_v58 = vmul.f32 1.442695, %v1059_v3  ;;  %v1061_v2 = vmin.f32 %v5119_v46, 0.0  ;;  %v5137_v57 = vadd.f32 %v5021_v1, %v928_v42  ;;  %3969 = vmatmul.mubr.msk.f32.gmra.mxu1 %vm359_vm0, %v1426_v26  ;;  %v4225_v45 = vpop.eup %4224  ;;  %4011 = vmatpush3.msra.mxu0 %v2549_v37 }
 0x157   : > { %v1428_v52 = vmul.f32 1.050701, %v1364_v32  ;;  %v1366_v40 = vsel %vm982_vm15, %v4967_v0, %v1302_v28  ;;  %v1429_v8 = vmul.f32 1.050701, %v1365_v22  ;;  %vm985_vm4 = vcmp.gt.f32.partialorder %v4998_v55, 0.0  ;;  %3971 = vmatprep.mubr.msk.f32.mxu1 %vm359_vm0, %v1427_v12 }
 0x158   : > { %v1304_v61 = vmul.f32 1.6732632, %v3379_v41  ;;  %v1367_v62 = vsel %vm983_vm3, %v4975_v20, %v1303_v5  ;;  %v3381_v56 = vadd.f32 -1.0, %v4223_v59  ;;  %4238 = vpow2.f32 %v1179_v54 }
 0x159   : > { %v4227_v10 = vpop.eup %4226  ;;  %v1305_v25 = vmul.f32 1.6732632, %v3380_v60  ;;  %v1183_v50 = vmul.f32 1.442695, %v1060_v19  ;;  %v1062_v24 = vmin.f32 %v5133_v27, 0.0  ;;  %v5153_v0 = vadd.f32 %v5021_v1, %v3899_v34 }
 0x15a   : > { %v3382_v6 = vadd.f32 -1.0, %v4225_v45  ;;  %4240 = vpow2.f32 %v1181_v58  ;;  %v1185_v7 = vmul.f32 1.442695, %v1061_v2  ;;  %v1063_v13 = vmin.f32 %v5137_v57, 0.0  ;;  %3972 = vmatmul.mubr.msk.f32.gmra.mxu1 %vm359_vm0, %v1428_v52  ;;  %v4229_v29 = vpop.eup %4228 }
 0x15b   : > { %v1430_v20 = vmul.f32 1.050701, %v1366_v40  ;;  %vm986_vm5 = vcmp.gt.f32.partialorder %v5011_v44, 0.0  ;;  %3974 = vmatprep.mubr.msk.f32.mxu1 %vm359_vm0, %v1429_v8  ;;  %v1368_v36 = vsel %vm984_vm2, %v4988_v63, %v1304_v61  ;;  %v1431_v48 = vmul.f32 1.050701, %v1367_v62 }
 0x15c   : > { %v1306_v1 = vmul.f32 1.6732632, %v3381_v56  ;;  %v3383_v26 = vadd.f32 -1.0, %v4227_v10  ;;  %v1369_v15 = vsel %vm985_vm4, %v4998_v55, %v1305_v25  ;;  %4242 = vpow2.f32 %v1183_v50 }
 0x15d   : > { %v1187_v18 = vmul.f32 1.442695, %v1062_v24  ;;  %v1064_v34 = vmin.f32 %v5153_v0, 0.0  ;;  %v1307_v4 = vmul.f32 1.6732632, %v3382_v6  ;;  %v3384_v39 = vadd.f32 -1.0, %v4229_v29 }
 0x15e   : > { %v4231_v17 = vpop.eup %4230  ;;  %4244 = vpow2.f32 %v1185_v7  ;;  %v1189_v49 = vmul.f32 1.442695, %v1063_v13  ;;  %3975 = vmatmul.mubr.msk.f32.gmra.mxu1 %vm359_vm0, %v1430_v20  ;;  %vm987_vm6 = vcmp.gt.f32.partialorder %v5025_v9, 0.0  ;;  %v1432_v63 = vmul.f32 1.050701, %v1368_v36 }
 0x15f   : > { %v4233_v43 = vpop.eup %4232  ;;  %3977 = vmatprep.mubr.msk.f32.mxu1 %vm359_vm0, %v1431_v48  ;;  %v1370_v55 = vsel %vm986_vm5, %v5011_v44, %v1306_v1  ;;  %vm988_vm7 = vcmp.gt.f32.partialorder %v5032_v21, 0.0  ;;  %v1308_v16 = vmul.f32 1.6732632, %v3383_v26  ;;  %v1433_v35 = vmul.f32 1.050701, %v1369_v15 }
 0x160   : > { %v3385_v14 = vadd.f32 -1.0, %v4231_v17  ;;  %4246 = vpow2.f32 %v1187_v18  ;;  %v1191_v47 = vmul.f32 1.442695, %v1064_v34  ;;  %v1371_v32 = vsel %vm987_vm6, %v5025_v9, %v1307_v4 }
 0x161   : > { %v1309_v12 = vmul.f32 1.6732632, %v3384_v39  ;;  %v3386_v28 = vadd.f32 -1.0, %v4233_v43  ;;  %4248 = vpow2.f32 %v1189_v49  ;;  %vm989_vm8 = vcmp.gt.f32.partialorder %v5040_v38, 0.0 }
 0x162   : > { %v4235_v3 = vpop.eup %4234  ;;  %3978 = vmatmul.mubr.msk.f32.gmra.mxu1 %vm359_vm0, %v1432_v63  ;;  %v1434_v44 = vmul.f32 1.050701, %v1370_v55  ;;  %v1372_v22 = vsel %vm988_vm7, %v5032_v21, %v1308_v16  ;;  %v1435_v5 = vmul.f32 1.050701, %v1371_v32  ;;  %v1310_v54 = vmul.f32 1.6732632, %v3385_v14 }
 0x163   : > { %v4237_v42 = vpop.eup %4236  ;;  %3980 = vmatprep.mubr.msk.f32.mxu1 %vm359_vm0, %v1433_v35  ;;  %v3387_v59 = vadd.f32 -1.0, %v4235_v3  ;;  %4250 = vpow2.f32 %v1191_v47  ;;  %vm990_vm9 = vcmp.gt.f32.partialorder %v5055_v11, 0.0  ;;  %v1373_v9 = vsel %vm989_vm8, %v5040_v38, %v1309_v12 }
 0x164   : > { %v1311_v60 = vmul.f32 1.6732632, %v3386_v28  ;;  %v3388_v19 = vadd.f32 -1.0, %v4237_v42  ;;  %vm991_vm10 = vcmp.gt.f32.partialorder %v5061_v31, 0.0  ;;  %v1436_v2 = vmul.f32 1.050701, %v1372_v22 }
 0x165   : > { %v4239_v41 = vpop.eup %4238  ;;  %v1374_v21 = vsel %vm990_vm9, %v5055_v11, %v1310_v54  ;;  %v1437_v37 = vmul.f32 1.050701, %v1373_v9  ;;  %v1312_v45 = vmul.f32 1.6732632, %v3387_v59  ;;  %vm992_vm11 = vcmp.gt.f32.partialorder %v5078_v53, 0.0 }
 0x166   : > { %3981 = vmatmul.mubr.msk.f32.gmra.mxu1 %vm359_vm0, %v1434_v44  ;;  %v3389_v52 = vadd.f32 -1.0, %v4239_v41  ;;  %v1375_v38 = vsel %vm991_vm10, %v5061_v31, %v1311_v60  ;;  %v1313_v8 = vmul.f32 1.6732632, %v3388_v19  ;;  %vm993_vm12 = vcmp.gt.f32.partialorder %v5083_v30, 0.0 }
 0x167   : > { %v4241_v58 = vpop.eup %4240  ;;  %3983 = vmatprep.mubr.msk.f32.mxu1 %vm359_vm0, %v1435_v5  ;;  %v1438_v56 = vmul.f32 1.050701, %v1374_v21  ;;  %v1376_v11 = vsel %vm992_vm11, %v5078_v53, %v1312_v45  ;;  %v1439_v10 = vmul.f32 1.050701, %v1375_v38  ;;  %vm994_vm13 = vcmp.gt.f32.partialorder %v5095_v51, 0.0 }
 0x168   : > { %v3390_v61 = vadd.f32 -1.0, %v4241_v58  ;;  %v1314_v25 = vmul.f32 1.6732632, %v3389_v52  ;;  %v1377_v31 = vsel %vm993_vm12, %v5083_v30, %v1313_v8  ;;  %vm995_vm14 = vcmp.gt.f32.partialorder %v5103_v23, 0.0 }
 0x169   : > { %v4243_v40 = vpop.eup %4242  ;;  %v1440_v29 = vmul.f32 1.050701, %v1376_v11  ;;  %v1441_v20 = vmul.f32 1.050701, %v1377_v31  ;;  %vm996_vm15 = vcmp.gt.f32.partialorder %v5115_v33, 0.0  ;;  %vm997_vm1 = vcmp.gt.f32.partialorder %v5119_v46, 0.0 }
 0x16a   : > { %3984 = vmatmul.mubr.msk.f32.gmra.mxu1 %vm359_vm0, %v1436_v2  ;;  %v3391_v50 = vadd.f32 -1.0, %v4243_v40  ;;  %v1315_v6 = vmul.f32 1.6732632, %v3390_v61  ;;  %v1378_v53 = vsel %vm994_vm13, %v5095_v51, %v1314_v25  ;;  %vm998_vm2 = vcmp.gt.f32.partialorder %v5133_v27, 0.0 }
 0x16b   : > { %v4245_v62 = vpop.eup %4244  ;;  %3986 = vmatprep.mubr.msk.f32.mxu1 %vm359_vm0, %v1437_v37  ;;  %v1442_v18 = vmul.f32 1.050701, %v1378_v53  ;;  %vm999_vm3 = vcmp.gt.f32.partialorder %v5137_v57, 0.0  ;;  %vm1000_vm4 = vcmp.gt.f32.partialorder %v5153_v0, 0.0 }
 0x16c   : > { %v3392_v7 = vadd.f32 -1.0, %v4245_v62  ;;  %v1316_v36 = vmul.f32 1.6732632, %v3391_v50  ;;  %v1379_v30 = vsel %vm995_vm14, %v5103_v23, %v1315_v6 }
 0x16d   : > { %v4247_v24 = vpop.eup %4246  ;;  %v1443_v51 = vmul.f32 1.050701, %v1379_v30 }
 0x16e   : > { %3987 = vmatmul.mubr.msk.f32.gmra.mxu1 %vm359_vm0, %v1438_v56  ;;  %v4249_v13 = vpop.eup %4248  ;;  %v3393_v48 = vadd.f32 -1.0, %v4247_v24  ;;  %v1317_v26 = vmul.f32 1.6732632, %v3392_v7  ;;  %v1380_v34 = vsel %vm996_vm15, %v5115_v33, %v1316_v36 }
 0x16f   : > { %3989 = vmatprep.mubr.msk.f32.mxu1 %vm359_vm0, %v1439_v10  ;;  %v3394_v15 = vadd.f32 -1.0, %v4249_v13  ;;  %v1444_v23 = vmul.f32 1.050701, %v1380_v34 }
 0x170   : > { %v4251_v1 = vpop.eup %4250  ;;  %v1318_v17 = vmul.f32 1.6732632, %v3393_v48  ;;  %v1381_v39 = vsel %vm997_vm1, %v5119_v46, %v1317_v26 }
 0x171   : > { %v3395_v4 = vadd.f32 -1.0, %v4251_v1  ;;  %v1319_v49 = vmul.f32 1.6732632, %v3394_v15  ;;  %v1445_v63 = vmul.f32 1.050701, %v1381_v39 }
 0x172   : > { %3990 = vmatmul.mubr.msk.f32.gmra.mxu1 %vm359_vm0, %v1440_v29  ;;  %v1382_v43 = vsel %vm998_vm2, %v5133_v27, %v1318_v17  ;;  %v5221_v27 = vld [vmem:[%s5889_s4] ss:$0 sm:$0xff] }
 0x173   : > { %3992 = vmatprep.mubr.msk.f32.mxu1 %vm359_vm0, %v1441_v20  ;;  %v1320_v55 = vmul.f32 1.6732632, %v3395_v4  ;;  %v1383_v33 = vsel %vm999_vm3, %v5137_v57, %v1319_v49  ;;  %v1446_v46 = vmul.f32 1.050701, %v1382_v43 }
 0x174   : > { %v1447_v35 = vmul.f32 1.050701, %v1383_v33 }
 0x175   : > { %v1384_v16 = vsel %vm1000_vm4, %v5153_v0, %v1320_v55 }
 0x176   : > { %3993 = vmatmul.mubr.msk.f32.gmra.mxu1 %vm359_vm0, %v1442_v18  ;;  %v1448_v14 = vmul.f32 1.050701, %v1384_v16 }
 0x177   : > { %3995 = vmatprep.mubr.msk.f32.mxu1 %vm359_vm0, %v1443_v51 }
 0x17a   : > { %3996 = vmatmul.mubr.msk.f32.gmra.mxu1 %vm359_vm0, %v1444_v23 }
 0x17b   : > { %3998 = vmatprep.mubr.msk.f32.mxu1 %vm359_vm0, %v1445_v63 }
 0x17e   : > { %3999 = vmatmul.mubr.msk.f32.gmra.mxu1 %vm359_vm0, %v1446_v46 }
 0x17f   : > { %4001 = vmatprep.mubr.msk.f32.mxu1 %vm359_vm0, %v1447_v35 }
 0x182   : > { %4002 = vmatmul.mubr.msk.f32.gmra.mxu1 %vm359_vm0, %v1448_v14 }
 0x1b5   : > { %v3910_v57 = vpop.f32.mrf.mxu1 }
 0x1b6   : > { %v1724_v47 = vadd.f32 %v3910_v57, %v5221_v27 }
 0x1b7   : > { %v1718_v3 = vpop.f32.mrf.mxu1 }
 0x1b8   : > { %v2102_v32 = vmin.f32 %v1724_v47, 0.0  ;;  %v5225_v0 = vadd.f32 %v5221_v27, %v1718_v3  ;;  %vm2038_vm5 = vcmp.gt.f32.partialorder %v1724_v47, 0.0 }
 0x1b9   : > { %v3913_v42 = vpop.f32.mrf.mxu1 }
 0x1ba   : > { %v2167_v12 = vmul.f32 1.442695, %v2102_v32  ;;  %v2101_v28 = vmin.f32 %v5225_v0, 0.0  ;;  %v5229_v44 = vadd.f32 %v3913_v42, %v5221_v27  ;;  %vm2037_vm6 = vcmp.gt.f32.partialorder %v5225_v0, 0.0 }
 0x1bb   : > { %v1728_v41 = vpop.f32.mrf.mxu1 }
 0x1bc   : > { %4252 = vpow2.f32 %v2167_v12  ;;  %v2165_v22 = vmul.f32 1.442695, %v2101_v28  ;;  %v2104_v5 = vmin.f32 %v5229_v44, 0.0  ;;  %v5233_v54 = vadd.f32 %v5221_v27, %v1728_v41 }
 0x1bd   : > { %v3916_v59 = vpop.f32.mrf.mxu1  ;;  %vm2040_vm7 = vcmp.gt.f32.partialorder %v5229_v44, 0.0 }
 0x1be   : > { %4254 = vpow2.f32 %v2165_v22  ;;  %v2171_v9 = vmul.f32 1.442695, %v2104_v5  ;;  %v2103_v60 = vmin.f32 %v5233_v54, 0.0  ;;  %v5237_v19 = vadd.f32 %v3916_v59, %v5221_v27 }
 0x1bf   : > { %v1738_v58 = vpop.f32.mrf.mxu1  ;;  %vm2039_vm8 = vcmp.gt.f32.partialorder %v5233_v54, 0.0 }
 0x1c0   : > { %4256 = vpow2.f32 %v2171_v9  ;;  %v2169_v2 = vmul.f32 1.442695, %v2103_v60  ;;  %v2106_v21 = vmin.f32 %v5237_v19, 0.0  ;;  %v5241_v37 = vadd.f32 %v5221_v27, %v1738_v58 }
 0x1c1   : > { %v3919_v45 = vpop.f32.mrf.mxu1  ;;  %vm2042_vm9 = vcmp.gt.f32.partialorder %v5237_v19, 0.0 }
 0x1c2   : > { %4258 = vpow2.f32 %v2169_v2  ;;  %v2175_v52 = vmul.f32 1.442695, %v2106_v21  ;;  %v5244_v40 = vadd.f32 %v3919_v45, %v5221_v27  ;;  %v2105_v38 = vmin.f32 %v5241_v37, 0.0 }
 0x1c3   : > { %v1748_v8 = vpop.f32.mrf.mxu1  ;;  %vm2041_vm10 = vcmp.gt.f32.partialorder %v5241_v37, 0.0 }
 0x1c4   : > { %4260 = vpow2.f32 %v2175_v52  ;;  %v2108_v61 = vmin.f32 %v5244_v40, 0.0  ;;  %v5249_v62 = vadd.f32 %v5221_v27, %v1748_v8  ;;  %v2173_v56 = vmul.f32 1.442695, %v2105_v38 }
 0x1c5   : > { %v3922_v11 = vpop.f32.mrf.mxu1  ;;  %vm2044_vm11 = vcmp.gt.f32.partialorder %v5244_v40, 0.0 }
 0x1c6   : > { %v2179_v10 = vmul.f32 1.442695, %v2108_v61  ;;  %v2107_v25 = vmin.f32 %v5249_v62, 0.0  ;;  %v5253_v50 = vadd.f32 %v3922_v11, %v5221_v27  ;;  %4262 = vpow2.f32 %v2173_v56 }
 0x1c7   : > { %v1758_v24 = vpop.f32.mrf.mxu1  ;;  %vm2043_vm12 = vcmp.gt.f32.partialorder %v5249_v62, 0.0 }
 0x1c8   : > { %4264 = vpow2.f32 %v2179_v10  ;;  %v2177_v6 = vmul.f32 1.442695, %v2107_v25  ;;  %v2110_v7 = vmin.f32 %v5253_v50, 0.0  ;;  %v5257_v29 = vadd.f32 %v5221_v27, %v1758_v24 }
 0x1c9   : > { %v4253_v31 = vpop.eup %4252  ;;  %vm2046_vm13 = vcmp.gt.f32.partialorder %v5253_v50, 0.0 }
 0x1ca   : > { %v3462_v13 = vadd.f32 -1.0, %v4253_v31  ;;  %v3925_v53 = vpop.f32.mrf.mxu1  ;;  %4266 = vpow2.f32 %v2177_v6  ;;  %v2183_v36 = vmul.f32 1.442695, %v2110_v7  ;;  %v2109_v26 = vmin.f32 %v5257_v29, 0.0 }
 0x1cb   : > { %v4255_v20 = vpop.eup %4254  ;;  %v5260_v48 = vadd.f32 %v3925_v53, %v5221_v27  ;;  %vm2045_vm14 = vcmp.gt.f32.partialorder %v5257_v29, 0.0 }
 0x1cc   : > { %v2358_v1 = vmul.f32 1.6732632, %v3462_v13  ;;  %v3461_v30 = vadd.f32 -1.0, %v4255_v20  ;;  %v1768_v15 = vpop.f32.mrf.mxu1  ;;  %4268 = vpow2.f32 %v2183_v36  ;;  %v2181_v4 = vmul.f32 1.442695, %v2109_v26 }
 0x1cd   : > { %v2112_v18 = vmin.f32 %v5260_v48, 0.0  ;;  %v5265_v34 = vadd.f32 %v5221_v27, %v1768_v15  ;;  %v4257_v51 = vpop.eup %4256  ;;  %vm2048_vm15 = vcmp.gt.f32.partialorder %v5260_v48, 0.0 }
 0x1ce   : > { %v2357_v17 = vmul.f32 1.6732632, %v3461_v30  ;;  %v2422_v39 = vsel %vm2038_vm5, %v1724_v47, %v2358_v1  ;;  %v3464_v49 = vadd.f32 -1.0, %v4257_v51  ;;  %4270 = vpow2.f32 %v2181_v4  ;;  %v3928_v33 = vpop.f32.mrf.mxu1 }
 0x1cf   : > { %v2187_v23 = vmul.f32 1.442695, %v2112_v18  ;;  %v4259_v43 = vpop.eup %4258  ;;  %v2111_v55 = vmin.f32 %v5265_v34, 0.0  ;;  %v2486_v57 = vmul.f32 1.050701, %v2422_v39  ;;  %v5271_v47 = vadd.f32 %v3928_v33, %v5221_v27 }
 0x1d0   : > { %v2421_v63 = vsel %vm2037_vm6, %v5225_v0, %v2357_v17  ;;  %v2360_v16 = vmul.f32 1.6732632, %v3464_v49  ;;  %v3463_v35 = vadd.f32 -1.0, %v4259_v43  ;;  %v1778_v32 = vpop.f32.mrf.mxu1  ;;  %vm2047_vm1 = vcmp.gt.f32.partialorder %v5265_v34, 0.0 }
 0x1d1   : > { %v2485_v46 = vmul.f32 1.050701, %v2421_v63  ;;  %4272 = vpow2.f32 %v2187_v23  ;;  %v4261_v14 = vpop.eup %4260  ;;  %v2185_v3 = vmul.f32 1.442695, %v2111_v55  ;;  %v5275_v0 = vadd.f32 %v5221_v27, %v1778_v32 }
 0x1d2   : > { %v2359_v12 = vmul.f32 1.6732632, %v3463_v35  ;;  %v3466_v28 = vadd.f32 -1.0, %v4261_v14  ;;  %v2424_v42 = vsel %vm2040_vm7, %v5229_v44, %v2360_v16  ;;  %v2114_v22 = vmin.f32 %v5271_v47, 0.0  ;;  %v3931_v41 = vpop.f32.mrf.mxu1 }
 0x1d3   : > { %4012 = vmatprep.mubr.msk.f32.mxu0 %vm359_vm0, %v2485_v46  ;;  %4274 = vpow2.f32 %v2185_v3  ;;  %v4263_v5 = vpop.eup %4262  ;;  %v2113_v60 = vmin.f32 %v5275_v0, 0.0  ;;  %v5286_v45 = vadd.f32 %v3931_v41, %v5221_v27  ;;  %v2488_v38 = vmul.f32 1.050701, %v2424_v42 }
 0x1d4   : > { %4013 = vmatmul.mubr.msk.f32.vlgmr.msra.gmra.mxu0 %vm359_vm0, %v2486_v57  ;;  %v2423_v59 = vsel %vm2039_vm8, %v5233_v54, %v2359_v12  ;;  %v2362_v9 = vmul.f32 1.6732632, %v3466_v28  ;;  %v3465_v21 = vadd.f32 -1.0, %v4263_v5  ;;  %v2191_v44 = vmul.f32 1.442695, %v2114_v22  ;;  %v1788_v52 = vpop.f32.mrf.mxu1 }
 0x1d5   : > { %v4265_v58 = vpop.eup %4264  ;;  %v2487_v2 = vmul.f32 1.050701, %v2423_v59  ;;  %v2189_v61 = vmul.f32 1.442695, %v2113_v60  ;;  %v5289_v56 = vadd.f32 %v5221_v27, %v1788_v52  ;;  %v2116_v31 = vmin.f32 %v5286_v45, 0.0 }
 0x1d6   : > { %v3468_v8 = vadd.f32 -1.0, %v4265_v58  ;;  %v2426_v11 = vsel %vm2042_vm9, %v5237_v19, %v2362_v9  ;;  %v2361_v10 = vmul.f32 1.6732632, %v3465_v21  ;;  %4276 = vpow2.f32 %v2191_v44  ;;  %v3934_v6 = vpop.f32.mrf.mxu1 }
 0x1d7   : > { %v4267_v54 = vpop.eup %4266  ;;  %4015 = vmatprep.mubr.msk.f32.mxu0 %vm359_vm0, %v2487_v2  ;;  %4278 = vpow2.f32 %v2189_v61  ;;  %v2115_v19 = vmin.f32 %v5289_v56, 0.0  ;;  %v5300_v53 = vadd.f32 %v3934_v6, %v5221_v27  ;;  %v2490_v26 = vmul.f32 1.050701, %v2426_v11 }
 0x1d8   : > { %v2364_v25 = vmul.f32 1.6732632, %v3468_v8  ;;  %v3467_v24 = vadd.f32 -1.0, %v4267_v54  ;;  %4016 = vmatmul.mubr.msk.f32.gmra.mxu0 %vm359_vm0, %v2488_v38  ;;  %v2425_v13 = vsel %vm2041_vm10, %v5241_v37, %v2361_v10  ;;  %v1798_v30 = vpop.f32.mrf.mxu1  ;;  %v2195_v15 = vmul.f32 1.442695, %v2116_v31 }
 0x1d9   : > { %v4269_v7 = vpop.eup %4268  ;;  %v2489_v20 = vmul.f32 1.050701, %v2425_v13  ;;  %v2193_v18 = vmul.f32 1.442695, %v2115_v19  ;;  %v5304_v51 = vadd.f32 %v5221_v27, %v1798_v30  ;;  %v2118_v49 = vmin.f32 %v5300_v53, 0.0 }
 0x1da   : > { %v2363_v36 = vmul.f32 1.6732632, %v3467_v24  ;;  %v3470_v1 = vadd.f32 -1.0, %v4269_v7  ;;  %v2428_v17 = vsel %vm2044_vm11, %v5244_v40, %v2364_v25  ;;  %4280 = vpow2.f32 %v2195_v15 }
 0x1db   : > { %v4271_v37 = vpop.eup %4270  ;;  %4018 = vmatprep.mubr.msk.f32.mxu0 %vm359_vm0, %v2489_v20  ;;  %4282 = vpow2.f32 %v2193_v18  ;;  %v2199_v40 = vmul.f32 1.442695, %v2118_v49  ;;  %v2117_v16 = vmin.f32 %v5304_v51, 0.0  ;;  %vm2050_vm2 = vcmp.gt.f32.partialorder %v5271_v47, 0.0 }
 0x1dc   : > { %v2427_v4 = vsel %vm2043_vm12, %v5249_v62, %v2363_v36  ;;  %v2366_v39 = vmul.f32 1.6732632, %v3470_v1  ;;  %v3469_v63 = vadd.f32 -1.0, %v4271_v37  ;;  %v3937_v55 = vpop.f32.mrf.mxu1  ;;  %4019 = vmatmul.mubr.msk.f32.gmra.mxu0 %vm359_vm0, %v2490_v26  ;;  %v2492_v62 = vmul.f32 1.050701, %v2428_v17 }
 0x1dd   : > { %v2491_v43 = vmul.f32 1.050701, %v2427_v4  ;;  %v5315_v35 = vadd.f32 %v3937_v55, %v5221_v27  ;;  %4284 = vpow2.f32 %v2199_v40  ;;  %v2197_v22 = vmul.f32 1.442695, %v2117_v16 }
 0x1de   : > { %v4273_v23 = vpop.eup %4272  ;;  %v2365_v46 = vmul.f32 1.6732632, %v3469_v63  ;;  %v1808_v14 = vpop.f32.mrf.mxu1  ;;  %v2430_v3 = vsel %vm2046_vm13, %v5253_v50, %v2366_v39  ;;  %vm2049_vm3 = vcmp.gt.f32.partialorder %v5275_v0, 0.0  ;;  %vm2052_vm4 = vcmp.gt.f32.partialorder %v5286_v45, 0.0 }
 0x1df   : > { %v3472_v33 = vadd.f32 -1.0, %v4273_v23  ;;  %4021 = vmatprep.mubr.msk.f32.mxu0 %vm359_vm0, %v2491_v43  ;;  %v5322_v12 = vadd.f32 %v5221_v27, %v1808_v14  ;;  %v2120_v5 = vmin.f32 %v5315_v35, 0.0  ;;  %v2494_v9 = vmul.f32 1.050701, %v2430_v3 }
 0x1e0   : > { %v4275_v57 = vpop.eup %4274  ;;  %v2429_v28 = vsel %vm2045_vm14, %v5257_v29, %v2365_v46  ;;  %4022 = vmatmul.mubr.msk.f32.gmra.mxu0 %vm359_vm0, %v2492_v62  ;;  %v3940_v59 = vpop.f32.mrf.mxu1  ;;  %4286 = vpow2.f32 %v2197_v22  ;;  %vm2051_vm5 = vcmp.gt.f32.partialorder %v5289_v56, 0.0  ;;  %vm2054_vm6 = vcmp.gt.f32.partialorder %v5300_v53, 0.0 }
 0x1e1   : > { %v2368_v32 = vmul.f32 1.6732632, %v3472_v33  ;;  %v3471_v42 = vadd.f32 -1.0, %v4275_v57  ;;  %v2493_v41 = vmul.f32 1.050701, %v2429_v28  ;;  %v2119_v50 = vmin.f32 %v5322_v12, 0.0 }
 0x1e2   : > { %v2203_v29 = vmul.f32 1.442695, %v2120_v5  ;;  %v5332_v21 = vadd.f32 %v3940_v59, %v5221_v27  ;;  %v1818_v44 = vpop.f32.mrf.mxu1  ;;  %vm2053_vm7 = vcmp.gt.f32.partialorder %v5304_v51, 0.0  ;;  %vm2056_vm8 = vcmp.gt.f32.partialorder %v5315_v35, 0.0 }
 0x1e3   : > { %v2367_v60 = vmul.f32 1.6732632, %v3471_v42  ;;  %v4277_v58 = vpop.eup %4276  ;;  %v2432_v2 = vsel %vm2048_vm15, %v5260_v48, %v2368_v32  ;;  %4024 = vmatprep.mubr.msk.f32.mxu0 %vm359_vm0, %v2493_v41  ;;  %v2201_v61 = vmul.f32 1.442695, %v2119_v50  ;;  %v5337_v54 = vadd.f32 %v5221_v27, %v1818_v44 }
 0x1e4   : > { %v4279_v52 = vpop.eup %4278  ;;  %v3474_v8 = vadd.f32 -1.0, %v4277_v58  ;;  %4025 = vmatmul.mubr.msk.f32.gmra.mxu0 %vm359_vm0, %v2494_v9  ;;  %4288 = vpow2.f32 %v2203_v29  ;;  %v2496_v10 = vmul.f32 1.050701, %v2432_v2  ;;  %v2122_v24 = vmin.f32 %v5332_v21, 0.0 }
 0x1e5   : > { %v2431_v38 = vsel %vm2047_vm1, %v5265_v34, %v2367_v60  ;;  %v3473_v11 = vadd.f32 -1.0, %v4279_v52  ;;  %4290 = vpow2.f32 %v2201_v61  ;;  %v2121_v34 = vmin.f32 %v5337_v54, 0.0  ;;  %v3943_v13 = vpop.f32.mrf.mxu1 }
 0x1e6   : > { %v2495_v48 = vmul.f32 1.050701, %v2431_v38  ;;  %v2370_v25 = vmul.f32 1.6732632, %v3474_v8  ;;  %v2207_v7 = vmul.f32 1.442695, %v2122_v24  ;;  %v5349_v1 = vadd.f32 %v3943_v13, %v5221_v27 }
 0x1e7   : > { %v2369_v31 = vmul.f32 1.6732632, %v3473_v11  ;;  %v4281_v19 = vpop.eup %4280  ;;  %v2205_v36 = vmul.f32 1.442695, %v2121_v34  ;;  %v1828_v18 = vpop.f32.mrf.mxu1  ;;  %vm2055_vm9 = vcmp.gt.f32.partialorder %v5322_v12, 0.0  ;;  %vm2058_vm10 = vcmp.gt.f32.partialorder %v5332_v21, 0.0 }
 0x1e8   : > { %4027 = vmatprep.mubr.msk.f32.mxu0 %vm359_vm0, %v2495_v48  ;;  %v2434_v6 = vsel %vm2050_vm2, %v5271_v47, %v2370_v25  ;;  %v4283_v30 = vpop.eup %4282  ;;  %v3476_v15 = vadd.f32 -1.0, %v4281_v19  ;;  %4292 = vpow2.f32 %v2207_v7  ;;  %v2124_v17 = vmin.f32 %v5349_v1, 0.0 }
 0x1e9   : > { %4028 = vmatmul.mubr.msk.f32.gmra.mxu0 %vm359_vm0, %v2496_v10  ;;  %v2433_v20 = vsel %vm2049_vm3, %v5275_v0, %v2369_v31  ;;  %v2498_v37 = vmul.f32 1.050701, %v2434_v6  ;;  %v3475_v47 = vadd.f32 -1.0, %v4283_v30  ;;  %4294 = vpow2.f32 %v2205_v36 }
 0x1ea   : > { %v2497_v26 = vmul.f32 1.050701, %v2433_v20  ;;  %v4285_v4 = vpop.eup %4284  ;;  %v2372_v39 = vmul.f32 1.6732632, %v3476_v15  ;;  %v5353_v49 = vadd.f32 %v5221_v27, %v1828_v18  ;;  %v2211_v43 = vmul.f32 1.442695, %v2124_v17 }
 0x1eb   : > { %v2371_v0 = vmul.f32 1.6732632, %v3475_v47  ;;  %v3478_v23 = vadd.f32 -1.0, %v4285_v4  ;;  %v3946_v57 = vpop.f32.mrf.mxu1  ;;  %vm2057_vm11 = vcmp.gt.f32.partialorder %v5337_v54, 0.0  ;;  %vm2060_vm12 = vcmp.gt.f32.partialorder %v5349_v1, 0.0 }
 0x1ec   : > { %4030 = vmatprep.mubr.msk.f32.mxu0 %vm359_vm0, %v2497_v26  ;;  %v2436_v63 = vsel %vm2052_vm4, %v5286_v45, %v2372_v39  ;;  %v2123_v55 = vmin.f32 %v5353_v49, 0.0  ;;  %4296 = vpow2.f32 %v2211_v43  ;;  %v5363_v32 = vadd.f32 %v3946_v57, %v5221_v27 }
 0x1ed   : > { %4031 = vmatmul.mubr.msk.f32.gmra.mxu0 %vm359_vm0, %v2498_v37  ;;  %v4287_v33 = vpop.eup %4286  ;;  %v2435_v40 = vsel %vm2051_vm5, %v5289_v56, %v2371_v0  ;;  %v2374_v62 = vmul.f32 1.6732632, %v3478_v23  ;;  %v2500_v3 = vmul.f32 1.050701, %v2436_v63  ;;  %v1838_v42 = vpop.f32.mrf.mxu1  ;;  %vm2059_vm13 = vcmp.gt.f32.partialorder %v5353_v49, 0.0 }
 0x1ee   : > { %v2499_v46 = vmul.f32 1.050701, %v2435_v40  ;;  %v3477_v16 = vadd.f32 -1.0, %v4287_v33  ;;  %v2209_v14 = vmul.f32 1.442695, %v2123_v55  ;;  %v2126_v5 = vmin.f32 %v5363_v32, 0.0 }
 0x1ef   : > { %v2438_v22 = vsel %vm2054_vm6, %v5300_v53, %v2374_v62  ;;  %v5371_v59 = vadd.f32 %v5221_v27, %v1838_v42  ;;  %vm2062_vm14 = vcmp.gt.f32.partialorder %v5363_v32, 0.0 }
 0x1f0   : > { %v2373_v45 = vmul.f32 1.6732632, %v3477_v16  ;;  %4298 = vpow2.f32 %v2209_v14  ;;  %4033 = vmatprep.mubr.msk.f32.mxu0 %vm359_vm0, %v2499_v46  ;;  %v2215_v2 = vmul.f32 1.442695, %v2126_v5  ;;  %v2502_v29 = vmul.f32 1.050701, %v2438_v22 }
 0x1f1   : > { %v4289_v28 = vpop.eup %4288  ;;  %4034 = vmatmul.mubr.msk.f32.gmra.mxu0 %vm359_vm0, %v2500_v3  ;;  %v2125_v53 = vmin.f32 %v5371_v59, 0.0  ;;  %vm2061_vm15 = vcmp.gt.f32.partialorder %v5371_v59, 0.0 }
 0x1f2   : > { %v4291_v56 = vpop.eup %4290  ;;  %v3480_v41 = vadd.f32 -1.0, %v4289_v28  ;;  %v2437_v9 = vsel %vm2053_vm7, %v5304_v51, %v2373_v45  ;;  %4300 = vpow2.f32 %v2215_v2 }
 0x1f3   : > { %v3479_v60 = vadd.f32 -1.0, %v4291_v56  ;;  %v2501_v50 = vmul.f32 1.050701, %v2437_v9  ;;  %v2213_v48 = vmul.f32 1.442695, %v2125_v53 }
 0x1f4   : > { %v2376_v58 = vmul.f32 1.6732632, %v3480_v41  ;;  %v3949_v25 = vpop.f32.mrf.mxu1 }
 0x1f5   : > { %v2375_v44 = vmul.f32 1.6732632, %v3479_v60  ;;  %v4293_v52 = vpop.eup %4292  ;;  %4036 = vmatprep.mubr.msk.f32.mxu0 %vm359_vm0, %v2501_v50  ;;  %4302 = vpow2.f32 %v2213_v48 }
 0x1f6   : > { %v2440_v38 = vsel %vm2056_vm8, %v5315_v35, %v2376_v58  ;;  %v4295_v8 = vpop.eup %4294  ;;  %v3482_v61 = vadd.f32 -1.0, %v4293_v52  ;;  %4037 = vmatmul.mubr.msk.f32.gmra.mxu0 %vm359_vm0, %v2502_v29  ;;  %v5383_v35 = vadd.f32 %v3949_v25, %v5221_v27  ;;  %v1848_v6 = vpop.f32.mrf.mxu1 }
 0x1f7   : > { %v2439_v51 = vsel %vm2055_vm9, %v5322_v12, %v2375_v44  ;;  %v3481_v10 = vadd.f32 -1.0, %v4295_v8  ;;  %v2504_v24 = vmul.f32 1.050701, %v2440_v38  ;;  %v5391_v19 = vadd.f32 %v5221_v27, %v1848_v6 }
 0x1f8   : > { %v2503_v11 = vmul.f32 1.050701, %v2439_v51  ;;  %v2378_v31 = vmul.f32 1.6732632, %v3482_v61  ;;  %v2128_v13 = vmin.f32 %v5383_v35, 0.0  ;;  %vm2064_vm1 = vcmp.gt.f32.partialorder %v5383_v35, 0.0 }
 0x1f9   : > { %v2377_v34 = vmul.f32 1.6732632, %v3481_v10  ;;  %v4297_v12 = vpop.eup %4296  ;;  %v2127_v15 = vmin.f32 %v5391_v19, 0.0  ;;  %vm2063_vm2 = vcmp.gt.f32.partialorder %v5391_v19, 0.0 }
 0x1fa   : > { %4039 = vmatprep.mubr.msk.f32.mxu0 %vm359_vm0, %v2503_v11  ;;  %v2442_v7 = vsel %vm2058_vm10, %v5332_v21, %v2378_v31  ;;  %v3484_v36 = vadd.f32 -1.0, %v4297_v12  ;;  %v2219_v26 = vmul.f32 1.442695, %v2128_v13  ;;  %v3952_v4 = vpop.f32.mrf.mxu1 }
 0x1fb   : > { %4040 = vmatmul.mubr.msk.f32.gmra.mxu0 %vm359_vm0, %v2504_v24  ;;  %v2441_v20 = vsel %vm2057_vm11, %v5337_v54, %v2377_v34  ;;  %v2506_v37 = vmul.f32 1.050701, %v2442_v7  ;;  %v2217_v17 = vmul.f32 1.442695, %v2127_v15  ;;  %v5398_v39 = vadd.f32 %v3952_v4, %v5221_v27 }
 0x1fc   : > { %v2505_v30 = vmul.f32 1.050701, %v2441_v20  ;;  %v2380_v47 = vmul.f32 1.6732632, %v3484_v36  ;;  %4304 = vpow2.f32 %v2219_v26  ;;  %v1858_v0 = vpop.f32.mrf.mxu1 }
 0x1fd   : > { %v4299_v18 = vpop.eup %4298  ;;  %4306 = vpow2.f32 %v2217_v17  ;;  %v2130_v43 = vmin.f32 %v5398_v39, 0.0  ;;  %v5406_v63 = vadd.f32 %v5221_v27, %v1858_v0  ;;  %vm2066_vm3 = vcmp.gt.f32.partialorder %v5398_v39, 0.0 }
 0x1fe   : > { %v3483_v21 = vadd.f32 -1.0, %v4299_v18  ;;  %4042 = vmatprep.mubr.msk.f32.mxu0 %vm359_vm0, %v2505_v30  ;;  %v2444_v23 = vsel %vm2060_vm12, %v5349_v1, %v2380_v47 }
 0x1ff   : > { %4043 = vmatmul.mubr.msk.f32.gmra.mxu0 %vm359_vm0, %v2506_v37  ;;  %v4301_v55 = vpop.eup %4300  ;;  %v2223_v46 = vmul.f32 1.442695, %v2130_v43  ;;  %v2508_v16 = vmul.f32 1.050701, %v2444_v23  ;;  %v2129_v14 = vmin.f32 %v5406_v63, 0.0  ;;  %vm2065_vm4 = vcmp.gt.f32.partialorder %v5406_v63, 0.0 }
 0x200   : > { %v2379_v54 = vmul.f32 1.6732632, %v3483_v21  ;;  %v3486_v62 = vadd.f32 -1.0, %v4301_v55 }
 0x201   : > { %4308 = vpow2.f32 %v2223_v46  ;;  %v2221_v28 = vmul.f32 1.442695, %v2129_v14 }
 0x202   : > { %v2443_v33 = vsel %vm2059_vm13, %v5353_v49, %v2379_v54  ;;  %v4303_v57 = vpop.eup %4302  ;;  %v2382_v3 = vmul.f32 1.6732632, %v3486_v62  ;;  %v3955_v45 = vpop.f32.mrf.mxu1 }
 0x203   : > { %v2507_v40 = vmul.f32 1.050701, %v2443_v33  ;;  %v3485_v1 = vadd.f32 -1.0, %v4303_v57  ;;  %v5413_v42 = vadd.f32 %v3955_v45, %v5221_v27  ;;  %4310 = vpow2.f32 %v2221_v28 }
 0x204   : > { %v1868_v56 = vpop.f32.mrf.mxu1  ;;  %v2446_v22 = vsel %vm2062_vm14, %v5363_v32, %v2382_v3 }
 0x205   : > { %4045 = vmatprep.mubr.msk.f32.mxu0 %vm359_vm0, %v2507_v40  ;;  %v2381_v49 = vmul.f32 1.6732632, %v3485_v1  ;;  %v2132_v41 = vmin.f32 %v5413_v42, 0.0  ;;  %v5420_v5 = vadd.f32 %v5221_v27, %v1868_v56  ;;  %v2510_v44 = vmul.f32 1.050701, %v2446_v22 }
 0x206   : > { %4046 = vmatmul.mubr.msk.f32.gmra.mxu0 %vm359_vm0, %v2508_v16  ;;  %v3958_v60 = vpop.f32.mrf.mxu1  ;;  %vm2068_vm5 = vcmp.gt.f32.partialorder %v5413_v42, 0.0 }
 0x207   : > { %v2445_v9 = vsel %vm2061_vm15, %v5371_v59, %v2381_v49  ;;  %v2227_v2 = vmul.f32 1.442695, %v2132_v41  ;;  %v2131_v29 = vmin.f32 %v5420_v5, 0.0  ;;  %v5425_v52 = vadd.f32 %v3958_v60, %v5221_v27 }
 0x208   : > { %v2509_v58 = vmul.f32 1.050701, %v2445_v9  ;;  %v1878_v32 = vpop.f32.mrf.mxu1  ;;  %vm2067_vm6 = vcmp.gt.f32.partialorder %v5420_v5, 0.0 }
 0x209   : > { %v4305_v50 = vpop.eup %4304  ;;  %4312 = vpow2.f32 %v2227_v2  ;;  %v2225_v8 = vmul.f32 1.442695, %v2131_v29  ;;  %v5428_v51 = vadd.f32 %v5221_v27, %v1878_v32  ;;  %v2134_v48 = vmin.f32 %v5425_v52, 0.0 }
 0x20a   : > { %v3488_v53 = vadd.f32 -1.0, %v4305_v50  ;;  %v4307_v38 = vpop.eup %4306  ;;  %4048 = vmatprep.mubr.msk.f32.mxu0 %vm359_vm0, %v2509_v58  ;;  %v3961_v11 = vpop.f32.mrf.mxu1  ;;  %vm2070_vm7 = vcmp.gt.f32.partialorder %v5425_v52, 0.0 }
 0x20b   : > { %v3487_v61 = vadd.f32 -1.0, %v4307_v38  ;;  %4049 = vmatmul.mubr.msk.f32.gmra.mxu0 %vm359_vm0, %v2510_v44  ;;  %4314 = vpow2.f32 %v2225_v8  ;;  %v2133_v10 = vmin.f32 %v5428_v51, 0.0  ;;  %v5435_v25 = vadd.f32 %v3961_v11, %v5221_v27 }
 0x20c   : > { %v2384_v59 = vmul.f32 1.6732632, %v3488_v53  ;;  %v2231_v31 = vmul.f32 1.442695, %v2134_v48  ;;  %v1888_v34 = vpop.f32.mrf.mxu1  ;;  %vm2069_vm8 = vcmp.gt.f32.partialorder %v5428_v51, 0.0 }
 0x20d   : > { %v2383_v24 = vmul.f32 1.6732632, %v3487_v61  ;;  %v2229_v12 = vmul.f32 1.442695, %v2133_v10  ;;  %v2136_v7 = vmin.f32 %v5435_v25, 0.0  ;;  %v5443_v36 = vadd.f32 %v5221_v27, %v1888_v34 }
 0x20e   : > { %v2448_v6 = vsel %vm2064_vm1, %v5383_v35, %v2384_v59  ;;  %v4309_v13 = vpop.eup %4308  ;;  %4316 = vpow2.f32 %v2231_v31  ;;  %v3964_v30 = vpop.f32.mrf.mxu1  ;;  %vm2072_vm9 = vcmp.gt.f32.partialorder %v5435_v25, 0.0 }
 0x20f   : > { %v2447_v20 = vsel %vm2063_vm2, %v5391_v19, %v2383_v24  ;;  %v3490_v15 = vadd.f32 -1.0, %v4309_v13  ;;  %4318 = vpow2.f32 %v2229_v12  ;;  %v2235_v18 = vmul.f32 1.442695, %v2136_v7 }
 0x210   : > { %v2511_v26 = vmul.f32 1.050701, %v2447_v20  ;;  %v2512_v37 = vmul.f32 1.050701, %v2448_v6  ;;  %v2135_v35 = vmin.f32 %v5443_v36, 0.0  ;;  %v5447_v47 = vadd.f32 %v3964_v30, %v5221_v27  ;;  %v1898_v21 = vpop.f32.mrf.mxu1  ;;  %v4311_v17 = vpop.eup %4310 }
 0x211   : > { %v2386_v4 = vmul.f32 1.6732632, %v3490_v15  ;;  %4320 = vpow2.f32 %v2235_v18  ;;  %v5450_v19 = vadd.f32 %v5221_v27, %v1898_v21  ;;  %v3489_v54 = vadd.f32 -1.0, %v4311_v17 }
 0x212   : > { %4051 = vmatprep.mubr.msk.f32.mxu0 %vm359_vm0, %v2511_v26  ;;  %v2233_v0 = vmul.f32 1.442695, %v2135_v35  ;;  %v2138_v23 = vmin.f32 %v5447_v47, 0.0  ;;  %v3967_v43 = vpop.f32.mrf.mxu1  ;;  %vm2071_vm10 = vcmp.gt.f32.partialorder %v5443_v36, 0.0  ;;  %vm2074_vm11 = vcmp.gt.f32.partialorder %v5447_v47, 0.0 }
 0x213   : > { %4052 = vmatmul.mubr.msk.f32.gmra.mxu0 %vm359_vm0, %v2512_v37  ;;  %v2137_v55 = vmin.f32 %v5450_v19, 0.0  ;;  %v5458_v33 = vadd.f32 %v3967_v43, %v5221_v27  ;;  %v2385_v40 = vmul.f32 1.6732632, %v3489_v54  ;;  %v2450_v16 = vsel %vm2066_vm3, %v5398_v39, %v2386_v4 }
 0x214   : > { %4322 = vpow2.f32 %v2233_v0  ;;  %v2239_v62 = vmul.f32 1.442695, %v2138_v23  ;;  %v1908_v46 = vpop.f32.mrf.mxu1  ;;  %v2514_v9 = vmul.f32 1.050701, %v2450_v16  ;;  %vm2073_vm12 = vcmp.gt.f32.partialorder %v5450_v19, 0.0 }
 0x215   : > { %v2237_v14 = vmul.f32 1.442695, %v2137_v55  ;;  %v2140_v57 = vmin.f32 %v5458_v33, 0.0  ;;  %v5464_v3 = vadd.f32 %v5221_v27, %v1908_v46  ;;  %v2449_v28 = vsel %vm2065_vm4, %v5406_v63, %v2385_v40 }
 0x216   : > { %v4313_v1 = vpop.eup %4312  ;;  %4324 = vpow2.f32 %v2239_v62  ;;  %v3970_v45 = vpop.f32.mrf.mxu1  ;;  %v2513_v49 = vmul.f32 1.050701, %v2449_v28  ;;  %vm2076_vm13 = vcmp.gt.f32.partialorder %v5458_v33, 0.0 }
 0x217   : > { %v3492_v56 = vadd.f32 -1.0, %v4313_v1  ;;  %4326 = vpow2.f32 %v2237_v14  ;;  %v2243_v22 = vmul.f32 1.442695, %v2140_v57  ;;  %v2139_v60 = vmin.f32 %v5464_v3, 0.0 }
 0x218   : > { %v4315_v41 = vpop.eup %4314  ;;  %v5469_v39 = vadd.f32 %v3970_v45, %v5221_v27  ;;  %v1918_v50 = vpop.f32.mrf.mxu1  ;;  %4054 = vmatprep.mubr.msk.f32.mxu0 %vm359_vm0, %v2513_v49  ;;  %vm2075_vm14 = vcmp.gt.f32.partialorder %v5464_v3, 0.0 }
 0x219   : > { %v2388_v58 = vmul.f32 1.6732632, %v3492_v56  ;;  %v3491_v2 = vadd.f32 -1.0, %v4315_v41  ;;  %4328 = vpow2.f32 %v2243_v22  ;;  %v5472_v29 = vadd.f32 %v5221_v27, %v1918_v50  ;;  %4055 = vmatmul.mubr.msk.f32.gmra.mxu0 %vm359_vm0, %v2514_v9 }
 0x21a   : > { %v2241_v63 = vmul.f32 1.442695, %v2139_v60  ;;  %v2142_v44 = vmin.f32 %v5469_v39, 0.0  ;;  %v3973_v53 = vpop.f32.mrf.mxu1  ;;  %vm2078_vm15 = vcmp.gt.f32.partialorder %v5469_v39, 0.0 }
 0x21b   : > { %v4317_v32 = vpop.eup %4316  ;;  %v2387_v38 = vmul.f32 1.6732632, %v3491_v2  ;;  %v2141_v8 = vmin.f32 %v5472_v29, 0.0  ;;  %v2452_v61 = vsel %vm2068_vm5, %v5413_v42, %v2388_v58  ;;  %v5484_v6 = vadd.f32 %v3973_v53, %v5221_v27 }
 0x21c   : > { %v4319_v59 = vpop.eup %4318  ;;  %v3494_v48 = vadd.f32 -1.0, %v4317_v32  ;;  %4330 = vpow2.f32 %v2241_v63  ;;  %v2247_v11 = vmul.f32 1.442695, %v2142_v44  ;;  %v1928_v10 = vpop.f32.mrf.mxu1  ;;  %v2516_v42 = vmul.f32 1.050701, %v2452_v61 }
 0x21d   : > { %v2451_v24 = vsel %vm2067_vm6, %v5420_v5, %v2387_v38  ;;  %v3493_v31 = vadd.f32 -1.0, %v4319_v59  ;;  %v2245_v34 = vmul.f32 1.442695, %v2141_v8  ;;  %v5487_v20 = vadd.f32 %v5221_v27, %v1928_v10 }
 0x21e   : > { %v4321_v12 = vpop.eup %4320  ;;  %v2515_v7 = vmul.f32 1.050701, %v2451_v24  ;;  %v2390_v13 = vmul.f32 1.6732632, %v3494_v48  ;;  %4332 = vpow2.f32 %v2247_v11  ;;  %v3976_v30 = vpop.f32.mrf.mxu1  ;;  %v2144_v18 = vmin.f32 %v5484_v6, 0.0 }
 0x21f   : > { %v2389_v26 = vmul.f32 1.6732632, %v3493_v31  ;;  %v3496_v15 = vadd.f32 -1.0, %v4321_v12  ;;  %4334 = vpow2.f32 %v2245_v34  ;;  %v2143_v37 = vmin.f32 %v5487_v20, 0.0 }
 0x220   : > { %v2454_v5 = vsel %vm2070_vm7, %v5425_v52, %v2390_v13  ;;  %v1938_v35 = vpop.f32.mrf.mxu1  ;;  %4057 = vmatprep.mubr.msk.f32.mxu0 %vm359_vm0, %v2515_v7  ;;  %v5499_v54 = vadd.f32 %v3976_v30, %v5221_v27  ;;  %v2251_v23 = vmul.f32 1.442695, %v2144_v18  ;;  %vm2077_vm1 = vcmp.gt.f32.partialorder %v5472_v29, 0.0 }
 0x221   : > { %v4323_v21 = vpop.eup %4322  ;;  %v2453_v17 = vsel %vm2069_vm8, %v5428_v51, %v2389_v26  ;;  %v2392_v4 = vmul.f32 1.6732632, %v3496_v15  ;;  %4058 = vmatmul.mubr.msk.f32.gmra.mxu0 %vm359_vm0, %v2516_v42  ;;  %v5503_v43 = vadd.f32 %v5221_v27, %v1938_v35  ;;  %v2518_v62 = vmul.f32 1.050701, %v2454_v5 }
 0x222   : > { %v2517_v52 = vmul.f32 1.050701, %v2453_v17  ;;  %v3495_v0 = vadd.f32 -1.0, %v4323_v21  ;;  %v3979_v55 = vpop.f32.mrf.mxu1  ;;  %v2249_v51 = vmul.f32 1.442695, %v2143_v37  ;;  %v2146_v46 = vmin.f32 %v5499_v54, 0.0 }
 0x223   : > { %v4325_v40 = vpop.eup %4324  ;;  %4336 = vpow2.f32 %v2251_v23  ;;  %v2456_v28 = vsel %vm2072_vm9, %v5435_v25, %v2392_v4  ;;  %v2145_v9 = vmin.f32 %v5503_v43, 0.0  ;;  %v5518_v60 = vadd.f32 %v3979_v55, %v5221_v27 }
 0x224   : > { %v4327_v16 = vpop.eup %4326  ;;  %v2391_v14 = vmul.f32 1.6732632, %v3495_v0  ;;  %v3498_v57 = vadd.f32 -1.0, %v4325_v40  ;;  %v1948_v1 = vpop.f32.mrf.mxu1  ;;  %4060 = vmatprep.mubr.msk.f32.mxu0 %vm359_vm0, %v2517_v52  ;;  %4338 = vpow2.f32 %v2249_v51  ;;  %v2255_v49 = vmul.f32 1.442695, %v2146_v46 }
 0x225   : > { %v3497_v45 = vadd.f32 -1.0, %v4327_v16  ;;  %4061 = vmatmul.mubr.msk.f32.gmra.mxu0 %vm359_vm0, %v2518_v62  ;;  %v2520_v63 = vmul.f32 1.050701, %v2456_v28  ;;  %v2253_v44 = vmul.f32 1.442695, %v2145_v9  ;;  %v2148_v53 = vmin.f32 %v5518_v60, 0.0 }
 0x226   : > { %v4329_v56 = vpop.eup %4328  ;;  %v2455_v22 = vsel %vm2071_vm10, %v5443_v36, %v2391_v14  ;;  %v2394_v41 = vmul.f32 1.6732632, %v3498_v57  ;;  %v3982_v50 = vpop.f32.mrf.mxu1  ;;  %4340 = vpow2.f32 %v2255_v49  ;;  %v5527_v61 = vadd.f32 %v5221_v27, %v1948_v1  ;;  %v5537_v27 = vld [vmem:[%s5889_s4] ss:$0 sm:$0xff] }
 0x227   : > { %v2519_v58 = vmul.f32 1.050701, %v2455_v22  ;;  %v2393_v2 = vmul.f32 1.6732632, %v3497_v45  ;;  %v3500_v25 = vadd.f32 -1.0, %v4329_v56  ;;  %4342 = vpow2.f32 %v2253_v44 }
 0x228   : > { %v1958_v32 = vpop.f32.mrf.mxu1  ;;  %v2458_v36 = vsel %vm2074_vm11, %v5447_v47, %v2394_v41  ;;  %v2259_v10 = vmul.f32 1.442695, %v2148_v53  ;;  %v2147_v47 = vmin.f32 %v5527_v61, 0.0  ;;  %vm2080_vm2 = vcmp.gt.f32.partialorder %v5484_v6, 0.0 }
 0x229   : > { %v4331_v38 = vpop.eup %4330  ;;  %v2457_v8 = vsel %vm2073_vm12, %v5450_v19, %v2393_v2  ;;  %v2396_v59 = vmul.f32 1.6732632, %v3500_v25  ;;  %4063 = vmatprep.mubr.msk.f32.mxu0 %vm359_vm0, %v2519_v58  ;;  %v5540_v19 = vadd.f32 %v5537_v27, %v3982_v50  ;;  %v2522_v12 = vmul.f32 1.050701, %v2458_v36 }
 0x22a   : > { %v2521_v48 = vmul.f32 1.050701, %v2457_v8  ;;  %v3499_v11 = vadd.f32 -1.0, %v4331_v38  ;;  %4064 = vmatmul.mubr.msk.f32.gmra.mxu0 %vm359_vm0, %v2520_v63  ;;  %v3985_v24 = vpop.f32.mrf.mxu1  ;;  %4344 = vpow2.f32 %v2259_v10  ;;  %v2257_v15 = vmul.f32 1.442695, %v2147_v47 }
 0x22b   : > { %v4333_v31 = vpop.eup %4332  ;;  %v2460_v42 = vsel %vm2076_vm13, %v5458_v33, %v2396_v59  ;;  %v2150_v5 = vmin.f32 %v5540_v19, 0.0  ;;  %v5547_v35 = vadd.f32 %v5537_v27, %v1958_v32  ;;  %v5550_v21 = vadd.f32 %v5537_v27, %v3985_v24 }
 0x22c   : > { %v4335_v34 = vpop.eup %4334  ;;  %v2395_v7 = vmul.f32 1.6732632, %v3499_v11  ;;  %v3502_v13 = vadd.f32 -1.0, %v4333_v31  ;;  %v1968_v30 = vpop.f32.mrf.mxu1  ;;  %4066 = vmatprep.mubr.msk.f32.mxu0 %vm359_vm0, %v2521_v48  ;;  %4346 = vpow2.f32 %v2257_v15  ;;  %v2524_v0 = vmul.f32 1.050701, %v2460_v42 }
 0x22d   : > { %v3501_v26 = vadd.f32 -1.0, %v4335_v34  ;;  %v2263_v33 = vmul.f32 1.442695, %v2150_v5  ;;  %v2152_v51 = vmin.f32 %v5550_v21, 0.0  ;;  %v5561_v1 = vadd.f32 %v5537_v27, %v1968_v30 }
 0x22e   : > { %v2459_v18 = vsel %vm2075_vm14, %v5464_v3, %v2395_v7  ;;  %v2398_v37 = vmul.f32 1.6732632, %v3502_v13  ;;  %4067 = vmatmul.mubr.msk.f32.gmra.mxu0 %vm359_vm0, %v2522_v12  ;;  %v3988_v17 = vpop.f32.mrf.mxu1  ;;  %v2149_v3 = vmin.f32 %v5547_v35, 0.0  ;;  %vm2079_vm3 = vcmp.gt.f32.partialorder %v5487_v20, 0.0 }
 0x22f   : > { %v2523_v4 = vmul.f32 1.050701, %v2459_v18  ;;  %v2397_v52 = vmul.f32 1.6732632, %v3501_v26  ;;  %4348 = vpow2.f32 %v2263_v33  ;;  %v2267_v49 = vmul.f32 1.442695, %v2152_v51 }
 0x230   : > { %v1978_v23 = vpop.f32.mrf.mxu1  ;;  %v4337_v55 = vpop.eup %4336  ;;  %v2462_v40 = vsel %vm2078_vm15, %v5469_v39, %v2398_v37  ;;  %v2261_v57 = vmul.f32 1.442695, %v2149_v3  ;;  %v5565_v39 = vadd.f32 %v5537_v27, %v3988_v17  ;;  %v2151_v9 = vmin.f32 %v5561_v1, 0.0 }
 0x231   : > { %v2461_v62 = vsel %vm2077_vm1, %v5472_v29, %v2397_v52  ;;  %4069 = vmatprep.mubr.msk.f32.mxu0 %vm359_vm0, %v2523_v4  ;;  %v4339_v46 = vpop.eup %4338  ;;  %v3504_v14 = vadd.f32 -1.0, %v4337_v55  ;;  %v5568_v29 = vadd.f32 %v5537_v27, %v1978_v23  ;;  %v2526_v22 = vmul.f32 1.050701, %v2462_v40 }
 0x232   : > { %v2525_v16 = vmul.f32 1.050701, %v2461_v62  ;;  %4070 = vmatmul.mubr.msk.f32.gmra.mxu0 %vm359_vm0, %v2524_v0  ;;  %v3991_v28 = vpop.f32.mrf.mxu1  ;;  %v3503_v45 = vadd.f32 -1.0, %v4339_v46  ;;  %4350 = vpow2.f32 %v2261_v57  ;;  %v2265_v63 = vmul.f32 1.442695, %v2151_v9 }
 0x233   : > { %v4341_v56 = vpop.eup %4340  ;;  %v2400_v41 = vmul.f32 1.6732632, %v3504_v14  ;;  %4352 = vpow2.f32 %v2267_v49  ;;  %v2154_v44 = vmin.f32 %v5565_v39, 0.0  ;;  %v2153_v8 = vmin.f32 %v5568_v29, 0.0 }
 0x234   : > { %v1988_v50 = vpop.f32.mrf.mxu1  ;;  %4072 = vmatprep.mubr.msk.f32.mxu0 %vm359_vm0, %v2525_v16  ;;  %v2399_v58 = vmul.f32 1.6732632, %v3503_v45  ;;  %v3506_v2 = vadd.f32 -1.0, %v4341_v56  ;;  %v4343_v32 = vpop.eup %4342  ;;  %4354 = vpow2.f32 %v2265_v63  ;;  %v5580_v47 = vadd.f32 %v5537_v27, %v3991_v28 }
 0x235   : > { %v2464_v25 = vsel %vm2080_vm2, %v5484_v6, %v2400_v41  ;;  %v3505_v48 = vadd.f32 -1.0, %v4343_v32  ;;  %v2271_v11 = vmul.f32 1.442695, %v2154_v44  ;;  %v2269_v31 = vmul.f32 1.442695, %v2153_v8 }
 0x236   : > { %4073 = vmatmul.mubr.msk.f32.gmra.mxu0 %vm359_vm0, %v2526_v22  ;;  %v3994_v53 = vpop.f32.mrf.mxu1  ;;  %v2463_v38 = vsel %vm2079_vm3, %v5487_v20, %v2399_v58  ;;  %v2402_v36 = vmul.f32 1.6732632, %v3506_v2  ;;  %v2528_v24 = vmul.f32 1.050701, %v2464_v25  ;;  %v5583_v34 = vadd.f32 %v5537_v27, %v1988_v50 }
 0x237   : > { %v2527_v59 = vmul.f32 1.050701, %v2463_v38  ;;  %v4345_v6 = vpop.eup %4344  ;;  %vm2082_vm4 = vcmp.gt.f32.partialorder %v5499_v54, 0.0  ;;  %v2401_v20 = vmul.f32 1.6732632, %v3505_v48  ;;  %4356 = vpow2.f32 %v2271_v11 }
 0x238   : > { %v1998_v10 = vpop.f32.mrf.mxu1  ;;  %v3508_v12 = vadd.f32 -1.0, %v4345_v6  ;;  %v2466_v13 = vsel %vm2082_vm4, %v5499_v54, %v2402_v36  ;;  %vm2081_vm5 = vcmp.gt.f32.partialorder %v5503_v43, 0.0  ;;  %4358 = vpow2.f32 %v2269_v31 }
 0x239   : > { %4075 = vmatprep.mubr.msk.f32.mxu0 %vm359_vm0, %v2527_v59  ;;  %v2156_v30 = vmin.f32 %v5580_v47, 0.0  ;;  %v4347_v42 = vpop.eup %4346  ;;  %v2465_v26 = vsel %vm2081_vm5, %v5503_v43, %v2401_v20  ;;  %v2155_v5 = vmin.f32 %v5583_v34, 0.0  ;;  %v5594_v18 = vadd.f32 %v5537_v27, %v3994_v53 }
 0x23a   : > { %v3997_v7 = vpop.f32.mrf.mxu1  ;;  %4076 = vmatmul.mubr.msk.f32.gmra.mxu0 %vm359_vm0, %v2528_v24  ;;  %v2404_v15 = vmul.f32 1.6732632, %v3508_v12  ;;  %v2529_v17 = vmul.f32 1.050701, %v2465_v26  ;;  %v3507_v4 = vadd.f32 -1.0, %v4347_v42  ;;  %v5597_v52 = vadd.f32 %v5537_v27, %v1998_v10 }
 0x23b   : > { %v2275_v54 = vmul.f32 1.442695, %v2156_v30  ;;  %v2530_v0 = vmul.f32 1.050701, %v2466_v13  ;;  %vm2084_vm6 = vcmp.gt.f32.partialorder %v5518_v60, 0.0  ;;  %v2158_v43 = vmin.f32 %v5594_v18, 0.0 }
 0x23c   : > { %v2008_v37 = vpop.f32.mrf.mxu1  ;;  %v4349_v33 = vpop.eup %4348  ;;  %v2273_v3 = vmul.f32 1.442695, %v2155_v5  ;;  %vm2083_vm7 = vcmp.gt.f32.partialorder %v5527_v61, 0.0  ;;  %v2403_v55 = vmul.f32 1.6732632, %v3507_v4  ;;  %4078 = vmatprep.mubr.msk.f32.mxu0 %vm359_vm0, %v2529_v17  ;;  %v2468_v62 = vsel %vm2084_vm6, %v5518_v60, %v2404_v15 }
 0x23d   : > { %v3510_v40 = vadd.f32 -1.0, %v4349_v33  ;;  %4360 = vpow2.f32 %v2275_v54  ;;  %v2279_v51 = vmul.f32 1.442695, %v2158_v43  ;;  %v2157_v46 = vmin.f32 %v5597_v52, 0.0 }
 0x23e   : > { %v4000_v23 = vpop.f32.mrf.mxu1  ;;  %4362 = vpow2.f32 %v2273_v3  ;;  %4079 = vmatmul.mubr.msk.f32.gmra.mxu0 %vm359_vm0, %v2530_v0  ;;  %v2467_v57 = vsel %vm2083_vm7, %v5527_v61, %v2403_v55  ;;  %v5608_v45 = vadd.f32 %v5537_v27, %v3997_v7  ;;  %v5611_v49 = vadd.f32 %v5537_v27, %v2008_v37 }
 0x23f   : > { %v4351_v14 = vpop.eup %4350  ;;  %v2406_v28 = vmul.f32 1.6732632, %v3510_v40  ;;  %v2531_v22 = vmul.f32 1.050701, %v2467_v57  ;;  %4364 = vpow2.f32 %v2279_v51  ;;  %v2277_v41 = vmul.f32 1.442695, %v2157_v46 }
 0x240   : > { %v2018_v16 = vpop.f32.mrf.mxu1  ;;  %v4353_v56 = vpop.eup %4352  ;;  %v3509_v60 = vadd.f32 -1.0, %v4351_v14  ;;  %v2532_v9 = vmul.f32 1.050701, %v2468_v62  ;;  %vm2086_vm8 = vcmp.gt.f32.partialorder %v5540_v19, 0.0  ;;  %v2160_v58 = vmin.f32 %v5608_v45, 0.0 }
 0x241   : > { %v3512_v50 = vadd.f32 -1.0, %v4353_v56  ;;  %v2470_v61 = vsel %vm2086_vm8, %v5540_v19, %v2406_v28  ;;  %vm2085_vm9 = vcmp.gt.f32.partialorder %v5547_v35, 0.0  ;;  %4366 = vpow2.f32 %v2277_v41  ;;  %4081 = vmatprep.mubr.msk.f32.mxu0 %vm359_vm0, %v2531_v22  ;;  %v4355_v63 = vpop.eup %4354 }
 0x242   : > { %v2405_v2 = vmul.f32 1.6732632, %v3509_v60  ;;  %v4003_v25 = vpop.f32.mrf.mxu1  ;;  %v2283_v53 = vmul.f32 1.442695, %v2160_v58  ;;  %v2159_v32 = vmin.f32 %v5611_v49, 0.0  ;;  %v5620_v38 = vadd.f32 %v5537_v27, %v4000_v23  ;;  %4082 = vmatmul.mubr.msk.f32.gmra.mxu0 %vm359_vm0, %v2532_v9 }
 0x243   : > { %v2408_v44 = vmul.f32 1.6732632, %v3512_v50  ;;  %vm2088_vm10 = vcmp.gt.f32.partialorder %v5550_v21, 0.0  ;;  %v3511_v19 = vadd.f32 -1.0, %v4355_v63  ;;  %v5626_v8 = vadd.f32 %v5537_v27, %v2018_v16 }
 0x244   : > { %v2469_v36 = vsel %vm2085_vm9, %v5547_v35, %v2405_v2  ;;  %v4357_v59 = vpop.eup %4356  ;;  %vm2087_vm11 = vcmp.gt.f32.partialorder %v5561_v1, 0.0  ;;  %4368 = vpow2.f32 %v2283_v53  ;;  %v2281_v11 = vmul.f32 1.442695, %v2159_v32  ;;  %v2028_v35 = vpop.f32.mrf.mxu1 }
 0x245   : > { %v2533_v48 = vmul.f32 1.050701, %v2469_v36  ;;  %v4359_v10 = vpop.eup %4358  ;;  %v2534_v6 = vmul.f32 1.050701, %v2470_v61  ;;  %v2407_v24 = vmul.f32 1.6732632, %v3511_v19  ;;  %v5630_v20 = vadd.f32 %v5537_v27, %v4003_v25 }
 0x246   : > { %v3514_v31 = vadd.f32 -1.0, %v4357_v59  ;;  %v2472_v12 = vsel %vm2088_vm10, %v5550_v21, %v2408_v44  ;;  %v3513_v7 = vadd.f32 -1.0, %v4359_v10  ;;  %4370 = vpow2.f32 %v2281_v11 }
 0x247   : > { %v2162_v13 = vmin.f32 %v5620_v38, 0.0  ;;  %4084 = vmatprep.mubr.msk.f32.mxu0 %vm359_vm0, %v2533_v48  ;;  %v2471_v30 = vsel %vm2087_vm11, %v5561_v1, %v2407_v24  ;;  %vm2090_vm12 = vcmp.gt.f32.partialorder %v5565_v39, 0.0  ;;  %v2161_v26 = vmin.f32 %v5626_v8, 0.0 }
 0x248   : > { %v2410_v42 = vmul.f32 1.6732632, %v3514_v31  ;;  %4085 = vmatmul.mubr.msk.f32.gmra.mxu0 %vm359_vm0, %v2534_v6  ;;  %v2535_v15 = vmul.f32 1.050701, %v2471_v30  ;;  %v2409_v5 = vmul.f32 1.6732632, %v3513_v7  ;;  %v5640_v21 = vadd.f32 %v5537_v27, %v2028_v35 }
 0x249   : > { %v2287_v37 = vmul.f32 1.442695, %v2162_v13  ;;  %v2536_v4 = vmul.f32 1.050701, %v2472_v12  ;;  %vm2089_vm13 = vcmp.gt.f32.partialorder %v5568_v29, 0.0  ;;  %v2164_v1 = vmin.f32 %v5630_v20, 0.0 }
 0x24a   : > { %v4361_v17 = vpop.eup %4360  ;;  %v2285_v54 = vmul.f32 1.442695, %v2161_v26  ;;  %v2474_v0 = vsel %vm2090_vm12, %v5565_v39, %v2410_v42  ;;  %v2473_v3 = vsel %vm2089_vm13, %v5568_v29, %v2409_v5  ;;  %4087 = vmatprep.mubr.msk.f32.mxu0 %vm359_vm0, %v2535_v15  ;;  %vm2092_vm14 = vcmp.gt.f32.partialorder %v5580_v47, 0.0  ;;  %v5681_v5 = vld [vmem:[#allocation2] ss:$0 sm:$0xff] }
 0x24b   : > { %v4363_v33 = vpop.eup %4362  ;;  %v3516_v43 = vadd.f32 -1.0, %v4361_v17  ;;  %4372 = vpow2.f32 %v2287_v37  ;;  %v2537_v23 = vmul.f32 1.050701, %v2473_v3  ;;  %v2291_v27 = vmul.f32 1.442695, %v2164_v1 }
 0x24c   : > { %v3515_v55 = vadd.f32 -1.0, %v4363_v33  ;;  %4374 = vpow2.f32 %v2285_v54  ;;  %4088 = vmatmul.mubr.msk.f32.gmra.mxu0 %vm359_vm0, %v2536_v4  ;;  %v4365_v40 = vpop.eup %4364  ;;  %v2163_v51 = vmin.f32 %v5640_v21, 0.0  ;;  %v2538_v46 = vmul.f32 1.050701, %v2474_v0 }
 0x24d   : > { %v2412_v62 = vmul.f32 1.6732632, %v3516_v43  ;;  %v3518_v16 = vadd.f32 -1.0, %v4365_v40  ;;  %4376 = vpow2.f32 %v2291_v27  ;;  %4090 = vmatprep.mubr.msk.f32.mxu0 %vm359_vm0, %v2537_v23  ;;  %vm2091_vm15 = vcmp.gt.f32.partialorder %v5583_v34, 0.0 }
 0x24e   : > { %v2411_v39 = vmul.f32 1.6732632, %v3515_v55  ;;  %v4367_v29 = vpop.eup %4366  ;;  %v2289_v57 = vmul.f32 1.442695, %v2163_v51  ;;  %vm2094_vm1 = vcmp.gt.f32.partialorder %v5594_v18, 0.0  ;;  %vm2093_vm2 = vcmp.gt.f32.partialorder %v5597_v52, 0.0 }
 0x24f   : > { %v2476_v14 = vsel %vm2092_vm14, %v5580_v47, %v2412_v62  ;;  %v2414_v56 = vmul.f32 1.6732632, %v3518_v16  ;;  %v3517_v22 = vadd.f32 -1.0, %v4367_v29  ;;  %vm2096_vm3 = vcmp.gt.f32.partialorder %v5608_v45, 0.0 }
 0x250   : > { %v2475_v28 = vsel %vm2091_vm15, %v5583_v34, %v2411_v39  ;;  %4091 = vmatmul.mubr.msk.f32.gmra.mxu0 %vm359_vm0, %v2538_v46  ;;  %4378 = vpow2.f32 %v2289_v57  ;;  %v2540_v9 = vmul.f32 1.050701, %v2476_v14  ;;  %vm2095_vm4 = vcmp.gt.f32.partialorder %v5611_v49, 0.0 }
 0x251   : > { %v2539_v60 = vmul.f32 1.050701, %v2475_v28  ;;  %v4369_v41 = vpop.eup %4368  ;;  %v2413_v50 = vmul.f32 1.6732632, %v3517_v22  ;;  %v2478_v58 = vsel %vm2094_vm1, %v5594_v18, %v2414_v56  ;;  %vm2098_vm5 = vcmp.gt.f32.partialorder %v5620_v38, 0.0 }
 0x252   : > { %v3520_v47 = vadd.f32 -1.0, %v4369_v41  ;;  %v2542_v44 = vmul.f32 1.050701, %v2478_v58  ;;  %vm2097_vm6 = vcmp.gt.f32.partialorder %v5626_v8, 0.0  ;;  %vm2100_vm7 = vcmp.gt.f32.partialorder %v5630_v20, 0.0 }
 0x253   : > { %4093 = vmatprep.mubr.msk.f32.mxu0 %vm359_vm0, %v2539_v60  ;;  %v4371_v61 = vpop.eup %4370  ;;  %v2477_v34 = vsel %vm2093_vm2, %v5597_v52, %v2413_v50  ;;  %vm2099_vm8 = vcmp.gt.f32.partialorder %v5640_v21, 0.0  ;;  %vm3137_vm9 = vcmask 7168  }
 0x254   : > { %4094 = vmatmul.mubr.msk.f32.gmra.mxu0 %vm359_vm0, %v2540_v9  ;;  %v2541_v2 = vmul.f32 1.050701, %v2477_v34  ;;  %v2416_v25 = vmul.f32 1.6732632, %v3520_v47  ;;  %v3519_v63 = vadd.f32 -1.0, %v4371_v61 }
 0x256   : > { %v2415_v53 = vmul.f32 1.6732632, %v3519_v63  ;;  %4096 = vmatprep.mubr.msk.f32.mxu0 %vm359_vm0, %v2541_v2  ;;  %v2480_v32 = vsel %vm2096_vm3, %v5608_v45, %v2416_v25 }
 0x257   : > { %v2544_v10 = vmul.f32 1.050701, %v2480_v32 }
 0x258   : > { %v4373_v18 = vpop.eup %4372  ;;  %4097 = vmatmul.mubr.msk.f32.gmra.mxu0 %vm359_vm0, %v2542_v44  ;;  %v2479_v52 = vsel %vm2095_vm4, %v5611_v49, %v2415_v53 }
 0x259   : > { %v4375_v36 = vpop.eup %4374  ;;  %v3522_v19 = vadd.f32 -1.0, %v4373_v18  ;;  %v2543_v59 = vmul.f32 1.050701, %v2479_v52 }
 0x25a   : > { %v3521_v48 = vadd.f32 -1.0, %v4375_v36  ;;  %v4377_v11 = vpop.eup %4376 }
 0x25b   : > { %v2418_v6 = vmul.f32 1.6732632, %v3522_v19  ;;  %v3524_v31 = vadd.f32 -1.0, %v4377_v11  ;;  %4099 = vmatprep.mubr.msk.f32.mxu0 %vm359_vm0, %v2543_v59 }
 0x25c   : > { %v2417_v24 = vmul.f32 1.6732632, %v3521_v48  ;;  %4100 = vmatmul.mubr.msk.f32.gmra.mxu0 %vm359_vm0, %v2544_v10 }
 0x25d   : > { %v2482_v45 = vsel %vm2098_vm5, %v5620_v38, %v2418_v6  ;;  %v4379_v35 = vpop.eup %4378  ;;  %v2420_v12 = vmul.f32 1.6732632, %v3524_v31 }
 0x25e   : > { %v2481_v49 = vsel %vm2097_vm6, %v5626_v8, %v2417_v24  ;;  %v3523_v13 = vadd.f32 -1.0, %v4379_v35  ;;  %v2546_v30 = vmul.f32 1.050701, %v2482_v45 }
 0x25f   : > { %v2545_v7 = vmul.f32 1.050701, %v2481_v49  ;;  %v2484_v26 = vsel %vm2100_vm7, %v5630_v20, %v2420_v12 }
 0x260   : > { %v2419_v42 = vmul.f32 1.6732632, %v3523_v13  ;;  %v2548_v8 = vmul.f32 1.050701, %v2484_v26 }
 0x261   : > { %4102 = vmatprep.mubr.msk.f32.mxu0 %vm359_vm0, %v2545_v7 }
 0x262   : > { %4103 = vmatmul.mubr.msk.f32.gmra.mxu0 %vm359_vm0, %v2546_v30  ;;  %v2483_v38 = vsel %vm2099_vm8, %v5640_v21, %v2419_v42 }
 0x263   : > { %v2547_v15 = vmul.f32 1.050701, %v2483_v38 }
 0x265   : > { %4105 = vmatprep.mubr.msk.f32.mxu0 %vm359_vm0, %v2547_v15 }
 0x266   : > { %4106 = vmatmul.mubr.msk.f32.gmra.mxu0 %vm359_vm0, %v2548_v8 }
 0x294   : > { %v4014_v20 = vpop.f32.mrf.mxu0 }
 0x295   : > { %v2824_v37 = vadd.f32 %v4014_v20, %v5681_v5 }
 0x296   : > { %v2818_v21 = vpop.f32.mrf.mxu0 }
 0x297   : > { %3139 = vst.msk [vmem:[%s5688_s22 + $0x8] sm:$0xff] %vm3137_vm9, %v2824_v37  ;;  %v2819_v17 = vadd.f32 %v5681_v5, %v2818_v21 }
 0x298   : > { %v4017_v4 = vpop.f32.mrf.mxu0 }
 0x299   : > { %3138 = vst.msk [vmem:[%s5688_s22] sm:$0xff] %vm3137_vm9, %v2819_v17  ;;  %v2834_v54 = vadd.f32 %v4017_v4, %v5681_v5 }
 0x29a   : > { %v2828_v1 = vpop.f32.mrf.mxu0 }
 0x29b   : > { %3141 = vst.msk [vmem:[%s5688_s22 + $0x18] sm:$0xff] %vm3137_vm9, %v2834_v54  ;;  %v2829_v33 = vadd.f32 %v5681_v5, %v2828_v1 }
 0x29c   : > { %v4020_v0 = vpop.f32.mrf.mxu0 }
 0x29d   : > { %3140 = vst.msk [vmem:[%s5688_s22 + $0x10] sm:$0xff] %vm3137_vm9, %v2829_v33  ;;  %v2844_v3 = vadd.f32 %v4020_v0, %v5681_v5 }
 0x29e   : > { %v2838_v43 = vpop.f32.mrf.mxu0 }
 0x29f   : > { %3143 = vst.msk [vmem:[%s5688_s22 + $0x28] sm:$0xff] %vm3137_vm9, %v2844_v3  ;;  %v2839_v23 = vadd.f32 %v5681_v5, %v2838_v43 }
 0x2a0   : > { %v4023_v55 = vpop.f32.mrf.mxu0 }
 0x2a1   : > { %3142 = vst.msk [vmem:[%s5688_s22 + $0x20] sm:$0xff] %vm3137_vm9, %v2839_v23  ;;  %v2854_v27 = vadd.f32 %v4023_v55, %v5681_v5 }
 0x2a2   : > { %v2848_v40 = vpop.f32.mrf.mxu0 }
 0x2a3   : > { %3145 = vst.msk [vmem:[%s5688_s22 + $0x38] sm:$0xff] %vm3137_vm9, %v2854_v27  ;;  %v2849_v62 = vadd.f32 %v5681_v5, %v2848_v40 }
 0x2a4   : > { %v4026_v51 = vpop.f32.mrf.mxu0 }
 0x2a5   : > { %3144 = vst.msk [vmem:[%s5688_s22 + $0x30] sm:$0xff] %vm3137_vm9, %v2849_v62  ;;  %v2864_v46 = vadd.f32 %v4026_v51, %v5681_v5 }
 0x2a6   : > { %v2858_v39 = vpop.f32.mrf.mxu0 }
 0x2a7   : > { %3147 = vst.msk [vmem:[%s5688_s22 + $0x48] sm:$0xff] %vm3137_vm9, %v2864_v46  ;;  %v2859_v16 = vadd.f32 %v5681_v5, %v2858_v39 }
 0x2a9   : > { %v4029_v29 = vpop.f32.mrf.mxu0  ;;  %3146 = vst.msk [vmem:[%s5688_s22 + $0x40] sm:$0xff] %vm3137_vm9, %v2859_v16 }
 0x2aa   : > { %v2874_v14 = vadd.f32 %v4029_v29, %v5681_v5 }
 0x2ab   : > { %v2868_v57 = vpop.f32.mrf.mxu0 }
 0x2ac   : > { %3149 = vst.msk [vmem:[%s5688_s22 + $0x58] sm:$0xff] %vm3137_vm9, %v2874_v14  ;;  %v2869_v28 = vadd.f32 %v5681_v5, %v2868_v57 }
 0x2ad   : > { %v4032_v56 = vpop.f32.mrf.mxu0 }
 0x2ae   : > { %3148 = vst.msk [vmem:[%s5688_s22 + $0x50] sm:$0xff] %vm3137_vm9, %v2869_v28  ;;  %v2884_v22 = vadd.f32 %v4032_v56, %v5681_v5 }
 0x2af   : > { %v2878_v60 = vpop.f32.mrf.mxu0 }
 0x2b0   : > { %3151 = vst.msk [vmem:[%s5688_s22 + $0x68] sm:$0xff] %vm3137_vm9, %v2884_v22  ;;  %v2879_v41 = vadd.f32 %v5681_v5, %v2878_v60 }
 0x2b1   : > { %v4035_v9 = vpop.f32.mrf.mxu0 }
 0x2b2   : > { %3150 = vst.msk [vmem:[%s5688_s22 + $0x60] sm:$0xff] %vm3137_vm9, %v2879_v41  ;;  %v2894_v50 = vadd.f32 %v4035_v9, %v5681_v5 }
 0x2b3   : > { %v2888_v58 = vpop.f32.mrf.mxu0 }
 0x2b4   : > { %3153 = vst.msk [vmem:[%s5688_s22 + $0x78] sm:$0xff] %vm3137_vm9, %v2894_v50  ;;  %v2889_v47 = vadd.f32 %v5681_v5, %v2888_v58 }
 0x2b6   : > { %3152 = vst.msk [vmem:[%s5688_s22 + $0x70] sm:$0xff] %vm3137_vm9, %v2889_v47  ;;  %v4038_v61 = vpop.f32.mrf.mxu0 }
 0x2b7   : > { %v2904_v34 = vadd.f32 %v4038_v61, %v5681_v5 }
 0x2b8   : > { %v2898_v2 = vpop.f32.mrf.mxu0 }
 0x2b9   : > { %3155 = vst.msk [vmem:[%s5688_s22 + $0x88] sm:$0xff] %vm3137_vm9, %v2904_v34  ;;  %v2899_v25 = vadd.f32 %v5681_v5, %v2898_v2 }
 0x2bb   : > { %v4041_v63 = vpop.f32.mrf.mxu0  ;;  %3154 = vst.msk [vmem:[%s5688_s22 + $0x80] sm:$0xff] %vm3137_vm9, %v2899_v25 }
 0x2bc   : > { %v2914_v44 = vadd.f32 %v4041_v63, %v5681_v5 }
 0x2bd   : > { %v2908_v53 = vpop.f32.mrf.mxu0 }
 0x2be   : > { %3157 = vst.msk [vmem:[%s5688_s22 + $0x98] sm:$0xff] %vm3137_vm9, %v2914_v44  ;;  %v2909_v18 = vadd.f32 %v5681_v5, %v2908_v53 }
 0x2bf   : > { %v4044_v32 = vpop.f32.mrf.mxu0 }
 0x2c0   : > { %3156 = vst.msk [vmem:[%s5688_s22 + $0x90] sm:$0xff] %vm3137_vm9, %v2909_v18  ;;  %v2924_v36 = vadd.f32 %v4044_v32, %v5681_v5 }
 0x2c1   : > { %v2918_v52 = vpop.f32.mrf.mxu0 }
 0x2c2   : > { %3159 = vst.msk [vmem:[%s5688_s22 + $0xa8] sm:$0xff] %vm3137_vm9, %v2924_v36  ;;  %v2919_v19 = vadd.f32 %v5681_v5, %v2918_v52 }
 0x2c4   : > { %3158 = vst.msk [vmem:[%s5688_s22 + $0xa0] sm:$0xff] %vm3137_vm9, %v2919_v19 }
 0x2c6   : > { %v4047_v59 = vpop.f32.mrf.mxu0 }
 0x2c7   : > { %v2934_v48 = vadd.f32 %v4047_v59, %v5681_v5 }
 0x2c8   : > { %v2928_v11 = vpop.f32.mrf.mxu0 }
 0x2c9   : > { %3161 = vst.msk [vmem:[%s5688_s22 + $0xb8] sm:$0xff] %vm3137_vm9, %v2934_v48  ;;  %v2929_v10 = vadd.f32 %v5681_v5, %v2928_v11 }
 0x2cb   : > { %3160 = vst.msk [vmem:[%s5688_s22 + $0xb0] sm:$0xff] %vm3137_vm9, %v2929_v10  ;;  %v4050_v6 = vpop.f32.mrf.mxu0 }
 0x2cc   : > { %v2944_v24 = vadd.f32 %v4050_v6, %v5681_v5 }
 0x2cd   : > { %v2938_v31 = vpop.f32.mrf.mxu0 }
 0x2ce   : > { %3163 = vst.msk [vmem:[%s5688_s22 + $0xc8] sm:$0xff] %vm3137_vm9, %v2944_v24  ;;  %v2939_v45 = vadd.f32 %v5681_v5, %v2938_v31 }
 0x2d0   : > { %3162 = vst.msk [vmem:[%s5688_s22 + $0xc0] sm:$0xff] %vm3137_vm9, %v2939_v45 }
 0x2d3   : > { %v4053_v35 = vpop.f32.mrf.mxu0 }
 0x2d4   : > { %v2954_v49 = vadd.f32 %v4053_v35, %v5681_v5 }
 0x2d5   : > { %v2948_v12 = vpop.f32.mrf.mxu0 }
 0x2d6   : > { %3165 = vst.msk [vmem:[%s5688_s22 + $0xd8] sm:$0xff] %vm3137_vm9, %v2954_v49  ;;  %v2949_v7 = vadd.f32 %v5681_v5, %v2948_v12 }
 0x2d8   : > { %3164 = vst.msk [vmem:[%s5688_s22 + $0xd0] sm:$0xff] %vm3137_vm9, %v2949_v7 }
 0x2d9   : > { %v4056_v13 = vpop.f32.mrf.mxu0 }
 0x2da   : > { %v2964_v30 = vadd.f32 %v4056_v13, %v5681_v5 }
 0x2db   : > { %v2958_v42 = vpop.f32.mrf.mxu0 }
 0x2dc   : > { %3167 = vst.msk [vmem:[%s5688_s22 + $0xe8] sm:$0xff] %vm3137_vm9, %v2964_v30  ;;  %v2959_v26 = vadd.f32 %v5681_v5, %v2958_v42 }
 0x2de   : > { %3166 = vst.msk [vmem:[%s5688_s22 + $0xe0] sm:$0xff] %vm3137_vm9, %v2959_v26 }
 0x2e1   : > { %v4059_v38 = vpop.f32.mrf.mxu0 }
 0x2e2   : > { %v2974_v15 = vadd.f32 %v4059_v38, %v5681_v5 }
 0x2e3   : > { %v2968_v8 = vpop.f32.mrf.mxu0 }
 0x2e4   : > { %3169 = vst.msk [vmem:[%s5688_s22 + $0xf8] sm:$0xff] %vm3137_vm9, %v2974_v15  ;;  %v2969_v20 = vadd.f32 %v5681_v5, %v2968_v8 }
 0x2e5   : > { %v4062_v37 = vpop.f32.mrf.mxu0 }
 0x2e6   : > { %3168 = vst.msk [vmem:[%s5688_s22 + $0xf0] sm:$0xff] %vm3137_vm9, %v2969_v20  ;;  %v2984_v21 = vadd.f32 %v4062_v37, %v5681_v5 }
 0x2e7   : > { %v2978_v17 = vpop.f32.mrf.mxu0 }
 0x2e8   : > { %3171 = vst.msk [vmem:[%s5688_s22 + $0x108] sm:$0xff] %vm3137_vm9, %v2984_v21  ;;  %v2979_v4 = vadd.f32 %v5681_v5, %v2978_v17 }
 0x2ea   : > { %3170 = vst.msk [vmem:[%s5688_s22 + $0x100] sm:$0xff] %vm3137_vm9, %v2979_v4  ;;  %v4065_v54 = vpop.f32.mrf.mxu0 }
 0x2eb   : > { %v2994_v1 = vadd.f32 %v4065_v54, %v5681_v5 }
 0x2ec   : > { %v2988_v33 = vpop.f32.mrf.mxu0 }
 0x2ed   : > { %3173 = vst.msk [vmem:[%s5688_s22 + $0x118] sm:$0xff] %vm3137_vm9, %v2994_v1  ;;  %v2989_v0 = vadd.f32 %v5681_v5, %v2988_v33 }
 0x2ee   : > { %v4068_v3 = vpop.f32.mrf.mxu0 }
 0x2ef   : > { %3172 = vst.msk [vmem:[%s5688_s22 + $0x110] sm:$0xff] %vm3137_vm9, %v2989_v0  ;;  %v3004_v43 = vadd.f32 %v4068_v3, %v5681_v5 }
 0x2f0   : > { %v2998_v23 = vpop.f32.mrf.mxu0 }
 0x2f1   : > { %3175 = vst.msk [vmem:[%s5688_s22 + $0x128] sm:$0xff] %vm3137_vm9, %v3004_v43  ;;  %v2999_v55 = vadd.f32 %v5681_v5, %v2998_v23 }
 0x2f2   : > { %v4071_v27 = vpop.f32.mrf.mxu0 }
 0x2f3   : > { %3174 = vst.msk [vmem:[%s5688_s22 + $0x120] sm:$0xff] %vm3137_vm9, %v2999_v55  ;;  %v3014_v40 = vadd.f32 %v4071_v27, %v5681_v5 }
 0x2f4   : > { %v3008_v62 = vpop.f32.mrf.mxu0 }
 0x2f5   : > { %3177 = vst.msk [vmem:[%s5688_s22 + $0x138] sm:$0xff] %vm3137_vm9, %v3014_v40  ;;  %v3009_v51 = vadd.f32 %v5681_v5, %v3008_v62 }
 0x2f6   : > { %v4074_v46 = vpop.f32.mrf.mxu0 }
 0x2f7   : > { %3176 = vst.msk [vmem:[%s5688_s22 + $0x130] sm:$0xff] %vm3137_vm9, %v3009_v51  ;;  %v3024_v39 = vadd.f32 %v4074_v46, %v5681_v5 }
 0x2f8   : > { %v3018_v16 = vpop.f32.mrf.mxu0 }
 0x2f9   : > { %3179 = vst.msk [vmem:[%s5688_s22 + $0x148] sm:$0xff] %vm3137_vm9, %v3024_v39  ;;  %v3019_v29 = vadd.f32 %v5681_v5, %v3018_v16 }
 0x2fa   : > { %v4077_v14 = vpop.f32.mrf.mxu0 }
 0x2fb   : > { %3178 = vst.msk [vmem:[%s5688_s22 + $0x140] sm:$0xff] %vm3137_vm9, %v3019_v29  ;;  %v3034_v57 = vadd.f32 %v4077_v14, %v5681_v5 }
 0x2fc   : > { %v3028_v28 = vpop.f32.mrf.mxu0 }
 0x2fd   : > { %3181 = vst.msk [vmem:[%s5688_s22 + $0x158] sm:$0xff] %vm3137_vm9, %v3034_v57  ;;  %v3029_v56 = vadd.f32 %v5681_v5, %v3028_v28 }
 0x2fe   : > { %v4080_v22 = vpop.f32.mrf.mxu0 }
 0x2ff   : > { %3180 = vst.msk [vmem:[%s5688_s22 + $0x150] sm:$0xff] %vm3137_vm9, %v3029_v56  ;;  %v3044_v60 = vadd.f32 %v4080_v22, %v5681_v5 }
 0x300   : > { %v3038_v41 = vpop.f32.mrf.mxu0 }
 0x301   : > { %3183 = vst.msk [vmem:[%s5688_s22 + $0x168] sm:$0xff] %vm3137_vm9, %v3044_v60  ;;  %v3039_v9 = vadd.f32 %v5681_v5, %v3038_v41 }
 0x302   : > { %v4083_v50 = vpop.f32.mrf.mxu0 }
 0x303   : > { %3182 = vst.msk [vmem:[%s5688_s22 + $0x160] sm:$0xff] %vm3137_vm9, %v3039_v9  ;;  %v3054_v58 = vadd.f32 %v4083_v50, %v5681_v5 }
 0x304   : > { %v3048_v47 = vpop.f32.mrf.mxu0 }
 0x305   : > { %3185 = vst.msk [vmem:[%s5688_s22 + $0x178] sm:$0xff] %vm3137_vm9, %v3054_v58  ;;  %v3049_v61 = vadd.f32 %v5681_v5, %v3048_v47 }
 0x307   : > { %3184 = vst.msk [vmem:[%s5688_s22 + $0x170] sm:$0xff] %vm3137_vm9, %v3049_v61 }
 0x308   : > { %v4086_v34 = vpop.f32.mrf.mxu0 }
 0x309   : > { %v3064_v2 = vadd.f32 %v4086_v34, %v5681_v5 }
 0x30a   : > { %v3058_v25 = vpop.f32.mrf.mxu0 }
 0x30b   : > { %3187 = vst.msk [vmem:[%s5688_s22 + $0x188] sm:$0xff] %vm3137_vm9, %v3064_v2  ;;  %v3059_v63 = vadd.f32 %v5681_v5, %v3058_v25 }
 0x30c   : > { %v4089_v44 = vpop.f32.mrf.mxu0 }
 0x30d   : > { %3186 = vst.msk [vmem:[%s5688_s22 + $0x180] sm:$0xff] %vm3137_vm9, %v3059_v63  ;;  %v3074_v53 = vadd.f32 %v4089_v44, %v5681_v5 }
 0x30e   : > { %v3068_v18 = vpop.f32.mrf.mxu0 }
 0x30f   : > { %3189 = vst.msk [vmem:[%s5688_s22 + $0x198] sm:$0xff] %vm3137_vm9, %v3074_v53  ;;  %v3069_v32 = vadd.f32 %v5681_v5, %v3068_v18 }
 0x310   : > { %v4092_v36 = vpop.f32.mrf.mxu0 }
 0x311   : > { %3188 = vst.msk [vmem:[%s5688_s22 + $0x190] sm:$0xff] %vm3137_vm9, %v3069_v32  ;;  %v3084_v52 = vadd.f32 %v4092_v36, %v5681_v5 }
 0x312   : > { %v3078_v19 = vpop.f32.mrf.mxu0 }
 0x313   : > { %3191 = vst.msk [vmem:[%s5688_s22 + $0x1a8] sm:$0xff] %vm3137_vm9, %v3084_v52  ;;  %v3079_v59 = vadd.f32 %v5681_v5, %v3078_v19 }
 0x314   : > { %v4095_v48 = vpop.f32.mrf.mxu0 }
 0x315   : > { %3190 = vst.msk [vmem:[%s5688_s22 + $0x1a0] sm:$0xff] %vm3137_vm9, %v3079_v59  ;;  %v3094_v11 = vadd.f32 %v4095_v48, %v5681_v5 }
 0x316   : > { %v3088_v10 = vpop.f32.mrf.mxu0 }
 0x317   : > { %3193 = vst.msk [vmem:[%s5688_s22 + $0x1b8] sm:$0xff] %vm3137_vm9, %v3094_v11  ;;  %v3089_v6 = vadd.f32 %v5681_v5, %v3088_v10 }
 0x318   : > { %v4098_v24 = vpop.f32.mrf.mxu0 }
 0x319   : > { %3192 = vst.msk [vmem:[%s5688_s22 + $0x1b0] sm:$0xff] %vm3137_vm9, %v3089_v6  ;;  %v3104_v31 = vadd.f32 %v4098_v24, %v5681_v5 }
 0x31a   : > { %v3098_v45 = vpop.f32.mrf.mxu0 }
 0x31b   : > { %3195 = vst.msk [vmem:[%s5688_s22 + $0x1c8] sm:$0xff] %vm3137_vm9, %v3104_v31  ;;  %v3099_v35 = vadd.f32 %v5681_v5, %v3098_v45 }
 0x31c   : > { %v4101_v49 = vpop.f32.mrf.mxu0 }
 0x31d   : > { %3194 = vst.msk [vmem:[%s5688_s22 + $0x1c0] sm:$0xff] %vm3137_vm9, %v3099_v35  ;;  %v3114_v12 = vadd.f32 %v4101_v49, %v5681_v5 }
 0x31e   : > { %v3108_v7 = vpop.f32.mrf.mxu0 }
 0x31f   : > { %3197 = vst.msk [vmem:[%s5688_s22 + $0x1d8] sm:$0xff] %vm3137_vm9, %v3114_v12  ;;  %v3109_v13 = vadd.f32 %v5681_v5, %v3108_v7 }
 0x321   : > { %3196 = vst.msk [vmem:[%s5688_s22 + $0x1d0] sm:$0xff] %vm3137_vm9, %v3109_v13 }
 0x322   : > { %v4104_v30 = vpop.f32.mrf.mxu0 }
 0x323   : > { %v3124_v42 = vadd.f32 %v4104_v30, %v5681_v5 }
 0x324   : > { %v3118_v26 = vpop.f32.mrf.mxu0 }
 0x325   : > { %3199 = vst.msk [vmem:[%s5688_s22 + $0x1e8] sm:$0xff] %vm3137_vm9, %v3124_v42  ;;  %v3119_v38 = vadd.f32 %v5681_v5, %v3118_v26 }
 0x326   : > { %v4107_v15 = vpop.f32.mrf.mxu0 }
 0x327   : > { %3198 = vst.msk [vmem:[%s5688_s22 + $0x1e0] sm:$0xff] %vm3137_vm9, %v3119_v38  ;;  %v3134_v8 = vadd.f32 %v4107_v15, %v5681_v5 }
 0x328   : > { %v3128_v20 = vpop.f32.mrf.mxu0 }
 0x329   : > { %3201 = vst.msk [vmem:[%s5688_s22 + $0x1f8] sm:$0xff] %vm3137_vm9, %v3134_v8  ;;  %v3129_v37 = vadd.f32 %v5681_v5, %v3128_v20 }
 0x32b   : > { %3200 = vst.msk [vmem:[%s5688_s22 + $0x1f0] sm:$0xff] %vm3137_vm9, %v3129_v37 }
 0x32c PF: > { %s19_s26 = sadd.s32 1, %s4388_s26  }
 0x32d   : > { %p16_p4 = scmp.ge.s32.totalorder %s19_s26, 4  }
 0x32f   :  { %18 = sbr.rel (!%p16_p4) target bundleno = 3 (0x3), region = 78 }

</bundles_post_ra>
